<compile_context>
chip_gen: v7x
topology: tpu7x:2x2x1
jax: 0.10.0
libtpu: 0.0.40
codegen_flags: <defaults>
</compile_context>

<pallas_src>
import functools
import math

import jax
import jax.numpy as jnp
from jax.experimental import pallas as pl
from jax.experimental.pallas import tpu as pltpu


def _round_up(x, m):
    return ((x + m - 1) // m) * m


def _vmem_budgets():
    """Generation-aware VMEM budgets: (tile-picker budget, Mosaic vmem limit)."""
    try:
        phys = int(pltpu.get_tpu_info().vmem_capacity_bytes)
    except Exception:
        phys = 64 * 1024 * 1024           # v7x per-TensorCore VMEM: safe lower bound
    tile_budget = min(int(phys * 0.55), 80 * 1024 * 1024)   # ~35 MiB v7x, ~70 MiB v5e/v6e
    vmem_limit = min(int(phys * 0.85), 112 * 1024 * 1024)   # ~54 MiB v7x, ~108 MiB v5e/v6e
    return tile_budget, vmem_limit


def _choose_pixel_tile(hw, cond, c, cd, n_heads, budget_bytes, max_ts=2048):
    """Largest lane tile (multiple of 128 dividing hw, capped at max_ts) whose
    lane-padded, double-buffered VMEM footprint fits budget_bytes."""
    c_sub = _round_up(c, 8)
    cd_sub = _round_up(cd, 8)

    def footprint(ts):
        lanes = _round_up(ts, 128)
        per_step = (cond * c_sub * lanes       # skip tile
                    + cd_sub * lanes           # dec tile
                    + c_sub * lanes            # out tile
                    + c_sub * 128)             # stats tile
        weights = (_round_up(2 * c, 8) * _round_up(cd, 128)       # wf
                   + _round_up(2 * c, 8) * _round_up(c, 128)      # wkv
                   + c_sub * _round_up(c, 128)                    # wo
                   + _round_up(n_heads, 8) * _round_up(c, 128)    # hsum
                   + 5 * c_sub * 128)                             # hbc + column biases
        inter = 10 * c_sub * _round_up(min(ts, 256), 128)         # per-chunk live set
        return 4 * (2 * (per_step + weights) + inter)             # f32, x2 double buffer

    start = min(max_ts, (hw // 128) * 128)
    cands = [t for t in range(start, 0, -128) if hw % t == 0]
    for t in cands:
        if footprint(t) <= budget_bytes:
            return t
    if cands:
        return cands[-1]      # best effort: smallest legal 128-multiple divisor
    return hw                 # full extent is always a legal block


# ---------------------------------------------------------------------------
# Kernel A: equaliser + per-pixel MHA over Cond frames + out-proj + residual,
#           plus per-tile per-channel (sum, sum-of-squares) for GroupNorm.
# Layout: channels on sublanes, pixels on lanes (channel-major / NCHW-native).
# ---------------------------------------------------------------------------
def _xattn_kernel(dec_ref, skip_ref, wf_ref, bf_ref, wkv_ref, hsum_ref, bk_ref,
                  hbc_ref, wo_ref, bo_ref, out_ref, stats_ref,
                  *, cond, include_query_as_key, has_equaliser, n_chunks, chunk):
    f32 = jnp.float32
    C = out_ref.shape[0]

    # loop-invariant weights (loaded once per grid step)
    wf = wf_ref[...].astype(f32)       # (2C, Cd) [Wc ; Wq@Wc]  or (C, Cd=C) Wq
    bf = bf_ref[...].astype(f32)       # matching column bias
    wkv = wkv_ref[...].astype(f32)     # (2C, C)  [Wk ; Wv]
    hsum = hsum_ref[...].astype(f32)   # (NH, C)  per-head 0/1 indicators * 1/sqrt(dh)
    bk = bk_ref[...].astype(f32)       # (C, 1)
    hbc = hbc_ref[...].astype(f32)     # (C, NH)  per-head broadcast indicators
    wo = wo_ref[...].astype(f32)       # (C, C)
    bo = bo_ref[...].astype(f32)       # (C, 1)  = out_proj_b + Wo @ bv (bv folded)

    n_kv = cond + (1 if include_query_as_key else 0)

    def process(off):
        dec_c = dec_ref[:, pl.ds(off, chunk)].astype(f32)                    # (Cd, CH)
        if has_equaliser:
            fused = jnp.dot(wf, dec_c, preferred_element_type=f32) + bf      # (2C, CH)
            dec_proj = fused[:C, :]
            q = fused[C:, :]
        else:
            dec_proj = dec_c
            q = jnp.dot(wf, dec_c, preferred_element_type=f32) + bf          # (C, CH)

        # K-bias folded into a single, key-independent per-head term.
        qbk = jnp.dot(hsum, q * bk, preferred_element_type=f32)              # (NH, CH)

        m = denom = acc = None
        for n in range(n_kv):
            if n == cond:
                y_n = dec_proj                      # query appended as extra key/value
            else:
                y_n = skip_ref[n, :, pl.ds(off, chunk)].astype(f32)          # (C, CH)
            kv = jnp.dot(wkv, y_n, preferred_element_type=f32)               # (2C, CH)
            k_n = kv[:C, :]
            v_n = kv[C:, :]
            s_n = jnp.dot(hsum, q * k_n, preferred_element_type=f32) + qbk   # (NH, CH)
            if m is None:                           # first key: exp(0)=1 shortcut
                m, denom, acc = s_n, jnp.ones_like(s_n), v_n
            else:                                   # online softmax update
                m_new = jnp.maximum(m, s_n)
                alpha = jnp.exp(m - m_new)
                p = jnp.exp(s_n - m_new)
                denom = denom * alpha + p
                acc = (acc * jnp.dot(hbc, alpha, preferred_element_type=f32)
                       + jnp.dot(hbc, p, preferred_element_type=f32) * v_n)
                m = m_new

        inv = jnp.dot(hbc, 1.0 / denom, preferred_element_type=f32)          # (C, CH)
        attn = acc * inv
        res = jnp.dot(wo, attn, preferred_element_type=f32) + bo + dec_proj  # (C, CH)
        out_ref[:, pl.ds(off, chunk)] = res.astype(out_ref.dtype)
        return (jnp.sum(res, axis=1, keepdims=True),
                jnp.sum(res * res, axis=1, keepdims=True))

    if n_chunks == 1:
        csum, csq = process(0)
    else:
        def body(i, carry):
            csum, csq = carry
            off = pl.multiple_of(i * chunk, chunk)
            s1, s2 = process(off)
            return csum + s1, csq + s2
        csum, csq = jax.lax.fori_loop(
            0, n_chunks, body,
            (jnp.zeros((C, 1), f32), jnp.zeros((C, 1), f32)))

    # per-tile partial GroupNorm statistics (single tiny write per grid step)
    stats_ref[:, 0:1] = csum
    stats_ref[:, 1:2] = csq


# ---------------------------------------------------------------------------
# Kernel B: GroupNorm apply as one FMA with precomputed per-(batch, channel)
#           scale / shift; writes NCHW directly.
# ---------------------------------------------------------------------------
def _gn_apply_kernel(x_ref, a_ref, b_ref, o_ref):
    x = x_ref[...].astype(jnp.float32)
    o_ref[...] = (x * a_ref[...] + b_ref[...]).astype(o_ref.dtype)


def decoder_cross_attention_2d(skip, dec, params, *, n_heads,
                               include_query_as_key=False, num_groups=8, eps=1e-5):
    """skip: (B, Cond, C, H, W); dec: (B, Cd, H, W) or (Cd, H, W). Returns (B, C, H, W)."""
    B, Cond, C, H, W = skip.shape
    if dec.ndim == 3:
        dec = jnp.broadcast_to(dec[None], (B,) + dec.shape)
    Cd = dec.shape[1]
    assert C % n_heads == 0 and C % num_groups == 0
    HW = H * W
    dh = C // n_heads
    out_dtype = dec.dtype
    f32 = jnp.float32
    scale = 1.0 / math.sqrt(dh)

    # ----- parameters, channel-major (column-vector) orientation -----------
    Wq = params["in_proj_w"][:C].astype(f32)
    Wk = params["in_proj_w"][C:2 * C].astype(f32)
    Wv = params["in_proj_w"][2 * C:].astype(f32)
    bq = params["in_proj_b"][:C].astype(f32).reshape(C, 1)
    bk = params["in_proj_b"][C:2 * C].astype(f32).reshape(C, 1)
    bv = params["in_proj_b"][2 * C:].astype(f32).reshape(C, 1)
    Wo = params["out_proj_w"].astype(f32)
    bo = params["out_proj_b"].astype(f32).reshape(C, 1)

    has_eq = params.get("eq_w") is not None
    if has_eq:
        Wc = params["eq_w"].reshape(C, Cd).astype(f32)
        bc = params["eq_b"].reshape(C, 1).astype(f32)
        wf = jnp.concatenate([Wc, Wq @ Wc], axis=0)              # (2C, Cd): [equaliser ; fused Q]
        bf = jnp.concatenate([bc, Wq @ bc + bq], axis=0)         # (2C, 1)
    else:
        assert Cd == C, "identity channel_equaliser requires Cd == C"
        wf = Wq                                                  # (C, C)
        bf = bq
    wkv = jnp.concatenate([Wk, Wv], axis=0)                      # (2C, C)
    bo_fused = bo + Wo @ bv                                      # V-bias folded (weights sum to 1)

    head_of_c = jnp.arange(C) // dh
    hsum = (jnp.arange(n_heads)[:, None] == head_of_c[None, :]).astype(f32) * scale  # (NH, C)
    hbc = (head_of_c[:, None] == jnp.arange(n_heads)[None, :]).astype(f32)           # (C, NH)

    gamma = params["gn_w"].astype(f32)
    beta = params["gn_b"].astype(f32)

    # ----- channel-major views: free reshapes only, no transposes ----------
    dec_flat = dec.reshape(B, Cd, HW)
    skip_flat = skip.reshape(B, Cond, C, HW)

    tile_budget, vmem_limit = _vmem_budgets()
    TS = _choose_pixel_tile(HW, Cond, C, Cd, n_heads, tile_budget)
    S = HW // TS
    CHUNK = 256
    if TS % CHUNK == 0 and TS > CHUNK:
        n_chunks, chunk = TS // CHUNK, CHUNK
    else:
        n_chunks, chunk = 1, TS

    kernel_a = functools.partial(
        _xattn_kernel, cond=Cond, include_query_as_key=include_query_as_key,
        has_equaliser=has_eq, n_chunks=n_chunks, chunk=chunk)

    attn_res, stats = pl.pallas_call(
        kernel_a,
        out_shape=(jax.ShapeDtypeStruct((B, C, HW), out_dtype),
                   jax.ShapeDtypeStruct((B, S, C, 2), f32)),
        grid_spec=pltpu.PrefetchScalarGridSpec(
            num_scalar_prefetch=0,
            grid=(B, S),
            in_specs=[
                pl.BlockSpec((None, Cd, TS), lambda b, s: (b, 0, s)),
                pl.BlockSpec((None, Cond, C, TS), lambda b, s: (b, 0, 0, s)),
                pl.BlockSpec(wf.shape, lambda b, s: (0, 0)),
                pl.BlockSpec(bf.shape, lambda b, s: (0, 0)),
                pl.BlockSpec((2 * C, C), lambda b, s: (0, 0)),
                pl.BlockSpec((n_heads, C), lambda b, s: (0, 0)),
                pl.BlockSpec((C, 1), lambda b, s: (0, 0)),
                pl.BlockSpec((C, n_heads), lambda b, s: (0, 0)),
                pl.BlockSpec((C, C), lambda b, s: (0, 0)),
                pl.BlockSpec((C, 1), lambda b, s: (0, 0)),
            ],
            out_specs=[
                pl.BlockSpec((None, C, TS), lambda b, s: (b, 0, s)),
                pl.BlockSpec((None, None, C, 2), lambda b, s: (b, s, 0, 0)),
            ],
        ),
        compiler_params=pltpu.CompilerParams(
            dimension_semantics=("parallel", "parallel"),
            vmem_limit_bytes=vmem_limit,
        ),
    )(dec_flat, skip_flat, wf, bf, wkv, hsum, bk, hbc, Wo, bo_fused)

    # ----- GroupNorm statistics finalize (tiny (B, C, 2)-sized jnp glue) ---
    Cg = C // num_groups
    count = float(HW * Cg)
    stats_tot = stats.sum(axis=1)                                 # (B, C, 2)
    col = stats_tot[..., 0]
    colsq = stats_tot[..., 1]
    mean_g = col.reshape(B, num_groups, Cg).sum(-1) / count
    ex2_g = colsq.reshape(B, num_groups, Cg).sum(-1) / count
    var_g = jnp.maximum(ex2_g - mean_g * mean_g, 0.0)
    istd_g = jax.lax.rsqrt(var_g + eps)
    mean_c = jnp.repeat(mean_g, Cg, axis=-1)                      # (B, C)
    istd_c = jnp.repeat(istd_g, Cg, axis=-1)
    a_c = (gamma[None, :] * istd_c).reshape(B, C, 1)
    b_c = (beta[None, :] - mean_c * istd_c * gamma[None, :]).reshape(B, C, 1)

    out_flat = pl.pallas_call(
        _gn_apply_kernel,
        out_shape=jax.ShapeDtypeStruct((B, C, HW), out_dtype),
        grid_spec=pltpu.PrefetchScalarGridSpec(
            num_scalar_prefetch=0,
            grid=(B, S),
            in_specs=[
                pl.BlockSpec((None, C, TS), lambda b, s: (b, 0, s)),
                pl.BlockSpec((None, C, 1), lambda b, s: (b, 0, 0)),
                pl.BlockSpec((None, C, 1), lambda b, s: (b, 0, 0)),
            ],
            out_specs=pl.BlockSpec((None, C, TS), lambda b, s: (b, 0, s)),
        ),
        compiler_params=pltpu.CompilerParams(
            dimension_semantics=("parallel", "parallel"),
            vmem_limit_bytes=vmem_limit,
        ),
    )(attn_res, a_c, b_c)

    return out_flat.reshape(B, C, H, W)


# ---------------------------------------------------------------------------
# Pure-JAX reference (mirrors the PyTorch module forward).
# ---------------------------------------------------------------------------
def _reference(skip, dec, params, *, n_heads, include_query_as_key=False,
               num_groups=8, eps=1e-5):
    hp = jax.lax.Precision.HIGHEST
    B, Cond, C, H, W = skip.shape
    if dec.ndim == 3:
        dec = jnp.broadcast_to(dec[None], (B,) + dec.shape)
    if params.get("eq_w") is not None:
        w = params["eq_w"].reshape(C, -1)
        dec = jnp.einsum("bdhw,cd->bchw", dec, w, precision=hp) \
            + params["eq_b"][None, :, None, None]
    x = dec.transpose(0, 2, 3, 1).reshape(-1, 1, C)
    y = skip.transpose(0, 3, 4, 1, 2).reshape(-1, Cond, C)
    if include_query_as_key:
        y = jnp.concatenate([y, x], axis=1)
    Wq, Wk, Wv = jnp.split(params["in_proj_w"], 3, axis=0)
    bq, bk, bv = jnp.split(params["in_proj_b"], 3)
    q = jnp.einsum("plc,dc->pld", x, Wq, precision=hp) + bq
    k = jnp.einsum("plc,dc->pld", y, Wk, precision=hp) + bk
    v = jnp.einsum("plc,dc->pld", y, Wv, precision=hp) + bv
    dh = C // n_heads
    P, L = k.shape[0], k.shape[1]
    qh = q.reshape(P, 1, n_heads, dh)
    kh = k.reshape(P, L, n_heads, dh)
    vh = v.reshape(P, L, n_heads, dh)
    s = jnp.einsum("pqnd,pknd->pnqk", qh, kh, precision=hp) / math.sqrt(dh)
    a = jax.nn.softmax(s, axis=-1)
    o = jnp.einsum("pnqk,pknd->pqnd", a, vh, precision=hp).reshape(P, 1, C)
    o = jnp.einsum("plc,dc->pld", o, params["out_proj_w"], precision=hp) + params["out_proj_b"]
    o = o.reshape(B, H, W, C).transpose(0, 3, 1, 2)
    xres = o + dec
    xg = xres.reshape(B, num_groups, C // num_groups, H, W)
    mean = xg.mean(axis=(2, 3, 4), keepdims=True)
    var = xg.var(axis=(2, 3, 4), keepdims=True)
    xn = ((xg - mean) * jax.lax.rsqrt(var + eps)).reshape(B, C, H, W)
    return xn * params["gn_w"][None, :, None, None] + params["gn_b"][None, :, None, None]


def _make_params(C, Cd, identity_eq, key):
    ks = jax.random.split(key, 8)
    s_in = 1.0 / math.sqrt(C)
    return {
        "eq_w": None if identity_eq else
                jax.random.normal(ks[0], (C, Cd), jnp.float32) / math.sqrt(Cd),
        "eq_b": None if identity_eq else
                0.1 * jax.random.normal(ks[1], (C,), jnp.float32),
        "in_proj_w": s_in * jax.random.normal(ks[2], (3 * C, C), jnp.float32),
        "in_proj_b": 0.1 * jax.random.normal(ks[3], (3 * C,), jnp.float32),
        "out_proj_w": s_in * jax.random.normal(ks[4], (C, C), jnp.float32),
        "out_proj_b": 0.1 * jax.random.normal(ks[5], (C,), jnp.float32),
        "gn_w": 1.0 + 0.1 * jax.random.normal(ks[6], (C,), jnp.float32),
        "gn_b": 0.1 * jax.random.normal(ks[7], (C,), jnp.float32),
    }


if __name__ == "__main__":
    key = jax.random.PRNGKey(0)
    keys = jax.random.split(key, 8)

    # ---- config A: conv equaliser (Cd != C), exercises the chunked fori_loop path ----
    B, Cond, C, Cd, H, W = 2, 4, 32, 16, 32, 32
    n_heads, num_groups = 4, 8
    skip = jax.random.normal(keys[0], (B, Cond, C, H, W), jnp.float32)
    dec = jax.random.normal(keys[1], (B, Cd, H, W), jnp.float32)
    params = _make_params(C, Cd, identity_eq=False, key=keys[2])

    fwd = jax.jit(functools.partial(
        decoder_cross_attention_2d, n_heads=n_heads,
        include_query_as_key=False, num_groups=num_groups))
    out = jax.block_until_ready(fwd(skip, dec, params))
    ref = jax.block_until_ready(_reference(
        skip, dec, params, n_heads=n_heads,
        include_query_as_key=False, num_groups=num_groups))
    assert out.shape == (B, C, H, W) and out.dtype == dec.dtype
    err_a = float(jnp.max(jnp.abs(out - ref)))
    assert jnp.allclose(out, ref, atol=2e-3, rtol=2e-3), f"config A mismatch, max_err={err_a}"

    # ---- config B: identity equaliser, 3-D decoder input, query-as-key path ----
    B2, Cond2, C2, H2, W2 = 2, 3, 32, 16, 16
    skip2 = jax.random.normal(keys[3], (B2, Cond2, C2, H2, W2), jnp.float32)
    dec2 = jax.random.normal(keys[4], (C2, H2, W2), jnp.float32)
    params2 = _make_params(C2, C2, identity_eq=True, key=keys[5])

    fwd2 = jax.jit(functools.partial(
        decoder_cross_attention_2d, n_heads=4,
        include_query_as_key=True, num_groups=8))
    out2 = jax.block_until_ready(fwd2(skip2, dec2, params2))
    ref2 = jax.block_until_ready(_reference(
        skip2, dec2, params2, n_heads=4,
        include_query_as_key=True, num_groups=8))
    assert out2.shape == (B2, C2, H2, W2)
    err_b = float(jnp.max(jnp.abs(out2 - ref2)))
    assert jnp.allclose(out2, ref2, atol=2e-3, rtol=2e-3), f"config B mismatch, max_err={err_b}"

    print("KERNEL_OK")
</pallas_src>

<mosaic_0001>
module attributes {stable_mosaic.version = 11 : i64} {
  func.func @_xattn_kernel(%arg0: i32, %arg1: i32, %arg2: memref<1x16x1024xf32, #tpu.memory_space<vmem>>, %arg3: memref<1x4x32x1024xf32, #tpu.memory_space<vmem>>, %arg4: memref<64x16xf32, #tpu.memory_space<vmem>>, %arg5: memref<64x1xf32, #tpu.memory_space<vmem>>, %arg6: memref<64x32xf32, #tpu.memory_space<vmem>>, %arg7: memref<4x32xf32, #tpu.memory_space<vmem>>, %arg8: memref<32x1xf32, #tpu.memory_space<vmem>>, %arg9: memref<32x4xf32, #tpu.memory_space<vmem>>, %arg10: memref<32x32xf32, #tpu.memory_space<vmem>>, %arg11: memref<32x1xf32, #tpu.memory_space<vmem>>, %arg12: memref<1x32x1024xf32, #tpu.memory_space<vmem>>, %arg13: memref<1x1x32x2xf32, #tpu.memory_space<vmem>>) attributes {dimension_semantics = [#tpu.dimension_semantics<parallel>, #tpu.dimension_semantics<parallel>], iteration_bounds = array<i64: 2, 1>, scalar_prefetch = 0 : i64, scratch_operands = 0 : i64, tpu.core_type = #tpu.core_type<tc>, window_params = [{transform_indices = @transform_0, window_bounds = array<i64: 1, 16, 1024>}, {transform_indices = @transform_1, window_bounds = array<i64: 1, 4, 32, 1024>}, {pipeline_mode = #tpu.pipeline_mode<synchronous>, transform_indices = @transform_2, window_bounds = array<i64: 64, 16>}, {pipeline_mode = #tpu.pipeline_mode<synchronous>, transform_indices = @transform_3, window_bounds = array<i64: 64, 1>}, {pipeline_mode = #tpu.pipeline_mode<synchronous>, transform_indices = @transform_4, window_bounds = array<i64: 64, 32>}, {pipeline_mode = #tpu.pipeline_mode<synchronous>, transform_indices = @transform_5, window_bounds = array<i64: 4, 32>}, {pipeline_mode = #tpu.pipeline_mode<synchronous>, transform_indices = @transform_6, window_bounds = array<i64: 32, 1>}, {pipeline_mode = #tpu.pipeline_mode<synchronous>, transform_indices = @transform_7, window_bounds = array<i64: 32, 4>}, {pipeline_mode = #tpu.pipeline_mode<synchronous>, transform_indices = @transform_8, window_bounds = array<i64: 32, 32>}, {pipeline_mode = #tpu.pipeline_mode<synchronous>, transform_indices = @transform_9, window_bounds = array<i64: 32, 1>}, {transform_indices = @transform_10, window_bounds = array<i64: 1, 32, 1024>}, {transform_indices = @transform_11, window_bounds = array<i64: 1, 1, 32, 2>}]} {
    %c0 = arith.constant 0 : index
    %c0_0 = arith.constant 0 : index
    %0 = vector.load %arg4[%c0, %c0_0] : memref<64x16xf32, #tpu.memory_space<vmem>>, vector<64x16xf32>
    %c0_1 = arith.constant 0 : index
    %c0_2 = arith.constant 0 : index
    %1 = vector.load %arg5[%c0_1, %c0_2] : memref<64x1xf32, #tpu.memory_space<vmem>>, vector<64x1xf32>
    %c0_3 = arith.constant 0 : index
    %c0_4 = arith.constant 0 : index
    %2 = vector.load %arg6[%c0_3, %c0_4] : memref<64x32xf32, #tpu.memory_space<vmem>>, vector<64x32xf32>
    %c0_5 = arith.constant 0 : index
    %c0_6 = arith.constant 0 : index
    %3 = vector.load %arg7[%c0_5, %c0_6] : memref<4x32xf32, #tpu.memory_space<vmem>>, vector<4x32xf32>
    %c0_7 = arith.constant 0 : index
    %c0_8 = arith.constant 0 : index
    %4 = vector.load %arg8[%c0_7, %c0_8] : memref<32x1xf32, #tpu.memory_space<vmem>>, vector<32x1xf32>
    %c0_9 = arith.constant 0 : index
    %c0_10 = arith.constant 0 : index
    %5 = vector.load %arg9[%c0_9, %c0_10] : memref<32x4xf32, #tpu.memory_space<vmem>>, vector<32x4xf32>
    %c0_11 = arith.constant 0 : index
    %c0_12 = arith.constant 0 : index
    %6 = vector.load %arg10[%c0_11, %c0_12] : memref<32x32xf32, #tpu.memory_space<vmem>>, vector<32x32xf32>
    %c0_13 = arith.constant 0 : index
    %c0_14 = arith.constant 0 : index
    %7 = vector.load %arg11[%c0_13, %c0_14] : memref<32x1xf32, #tpu.memory_space<vmem>>, vector<32x1xf32>
    %cst = arith.constant 0.000000e+00 : f32
    %8 = vector.broadcast %cst : f32 to vector<32x1xf32>
    %cst_15 = arith.constant 0.000000e+00 : f32
    %9 = vector.broadcast %cst_15 : f32 to vector<32x1xf32>
    %c0_i32 = arith.constant 0 : i32
    %c4_i32 = arith.constant 4 : i32
    %10 = arith.addi %c0_i32, %c4_i32 : i32
    %c1_i32 = arith.constant 1 : i32
    %11:2 = scf.for %arg14 = %c0_i32 to %10 step %c1_i32 iter_args(%arg15 = %8, %arg16 = %9) -> (vector<32x1xf32>, vector<32x1xf32>)  : i32 {
      %c256_i32 = arith.constant 256 : i32
      %18 = arith.muli %arg14, %c256_i32 : i32
      %19 = tpu.assume_multiple %18, 256 : i32
      %c0_24 = arith.constant 0 : index
      %c0_25 = arith.constant 0 : index
      %20 = arith.index_cast %19 : i32 to index
      %21 = vector.load %arg2[%c0_24, %c0_25, %20] : memref<1x16x1024xf32, #tpu.memory_space<vmem>>, vector<1x16x256xf32>
      %22 = vector.shape_cast %21 : vector<1x16x256xf32> to vector<16x256xf32>
      %cst_26 = arith.constant dense<0.000000e+00> : vector<64x256xf32>
      %23 = tpu.matmul %0, %22, %cst_26 {dimension_numbers = #tpu.dot_dimension_numbers<[1], [0], [0], [1], [0, 0, 1, 1], [], []>} : vector<64x16xf32>, vector<16x256xf32>, vector<64x256xf32> -> vector<64x256xf32>
      %24 = vector.broadcast %1 : vector<64x1xf32> to vector<64x256xf32>
      %25 = arith.addf %23, %24 : vector<64x256xf32>
      %26 = vector.extract_strided_slice %25 {offsets = [0, 0], sizes = [32, 256], strides = [1, 1]} : vector<64x256xf32> to vector<32x256xf32>
      %27 = vector.extract_strided_slice %25 {offsets = [32, 0], sizes = [32, 256], strides = [1, 1]} : vector<64x256xf32> to vector<32x256xf32>
      %28 = vector.broadcast %4 : vector<32x1xf32> to vector<32x256xf32>
      %29 = arith.mulf %27, %28 : vector<32x256xf32>
      %cst_27 = arith.constant dense<0.000000e+00> : vector<4x256xf32>
      %30 = tpu.matmul %3, %29, %cst_27 {dimension_numbers = #tpu.dot_dimension_numbers<[1], [0], [0], [1], [0, 0, 1, 1], [], []>} : vector<4x32xf32>, vector<32x256xf32>, vector<4x256xf32> -> vector<4x256xf32>
      %c0_28 = arith.constant 0 : index
      %c0_29 = arith.constant 0 : index
      %c0_30 = arith.constant 0 : index
      %31 = arith.index_cast %19 : i32 to index
      %32 = vector.load %arg3[%c0_28, %c0_29, %c0_30, %31] : memref<1x4x32x1024xf32, #tpu.memory_space<vmem>>, vector<1x1x32x256xf32>
      %33 = vector.shape_cast %32 : vector<1x1x32x256xf32> to vector<32x256xf32>
      %cst_31 = arith.constant dense<0.000000e+00> : vector<64x256xf32>
      %34 = tpu.matmul %2, %33, %cst_31 {dimension_numbers = #tpu.dot_dimension_numbers<[1], [0], [0], [1], [0, 0, 1, 1], [], []>} : vector<64x32xf32>, vector<32x256xf32>, vector<64x256xf32> -> vector<64x256xf32>
      %35 = vector.extract_strided_slice %34 {offsets = [0, 0], sizes = [32, 256], strides = [1, 1]} : vector<64x256xf32> to vector<32x256xf32>
      %36 = vector.extract_strided_slice %34 {offsets = [32, 0], sizes = [32, 256], strides = [1, 1]} : vector<64x256xf32> to vector<32x256xf32>
      %37 = arith.mulf %27, %35 : vector<32x256xf32>
      %cst_32 = arith.constant dense<0.000000e+00> : vector<4x256xf32>
      %38 = tpu.matmul %3, %37, %cst_32 {dimension_numbers = #tpu.dot_dimension_numbers<[1], [0], [0], [1], [0, 0, 1, 1], [], []>} : vector<4x32xf32>, vector<32x256xf32>, vector<4x256xf32> -> vector<4x256xf32>
      %39 = arith.addf %38, %30 : vector<4x256xf32>
      %cst_33 = arith.constant 1.000000e+00 : f32
      %40 = vector.broadcast %cst_33 : f32 to vector<4x256xf32>
      %c0_34 = arith.constant 0 : index
      %c1_35 = arith.constant 1 : index
      %c0_36 = arith.constant 0 : index
      %41 = arith.index_cast %19 : i32 to index
      %42 = vector.load %arg3[%c0_34, %c1_35, %c0_36, %41] : memref<1x4x32x1024xf32, #tpu.memory_space<vmem>>, vector<1x1x32x256xf32>
      %43 = vector.shape_cast %42 : vector<1x1x32x256xf32> to vector<32x256xf32>
      %cst_37 = arith.constant dense<0.000000e+00> : vector<64x256xf32>
      %44 = tpu.matmul %2, %43, %cst_37 {dimension_numbers = #tpu.dot_dimension_numbers<[1], [0], [0], [1], [0, 0, 1, 1], [], []>} : vector<64x32xf32>, vector<32x256xf32>, vector<64x256xf32> -> vector<64x256xf32>
      %45 = vector.extract_strided_slice %44 {offsets = [0, 0], sizes = [32, 256], strides = [1, 1]} : vector<64x256xf32> to vector<32x256xf32>
      %46 = vector.extract_strided_slice %44 {offsets = [32, 0], sizes = [32, 256], strides = [1, 1]} : vector<64x256xf32> to vector<32x256xf32>
      %47 = arith.mulf %27, %45 : vector<32x256xf32>
      %cst_38 = arith.constant dense<0.000000e+00> : vector<4x256xf32>
      %48 = tpu.matmul %3, %47, %cst_38 {dimension_numbers = #tpu.dot_dimension_numbers<[1], [0], [0], [1], [0, 0, 1, 1], [], []>} : vector<4x32xf32>, vector<32x256xf32>, vector<4x256xf32> -> vector<4x256xf32>
      %49 = arith.addf %48, %30 : vector<4x256xf32>
      %50 = arith.maximumf %39, %49 : vector<4x256xf32>
      %51 = arith.subf %39, %50 : vector<4x256xf32>
      %52 = math.exp %51 : vector<4x256xf32>
      %53 = arith.subf %49, %50 : vector<4x256xf32>
      %54 = math.exp %53 : vector<4x256xf32>
      %55 = arith.mulf %40, %52 : vector<4x256xf32>
      %56 = arith.addf %55, %54 : vector<4x256xf32>
      %cst_39 = arith.constant dense<0.000000e+00> : vector<32x256xf32>
      %57 = tpu.matmul %5, %52, %cst_39 {dimension_numbers = #tpu.dot_dimension_numbers<[1], [0], [0], [1], [0, 0, 1, 1], [], []>} : vector<32x4xf32>, vector<4x256xf32>, vector<32x256xf32> -> vector<32x256xf32>
      %58 = arith.mulf %36, %57 : vector<32x256xf32>
      %cst_40 = arith.constant dense<0.000000e+00> : vector<32x256xf32>
      %59 = tpu.matmul %5, %54, %cst_40 {dimension_numbers = #tpu.dot_dimension_numbers<[1], [0], [0], [1], [0, 0, 1, 1], [], []>} : vector<32x4xf32>, vector<4x256xf32>, vector<32x256xf32> -> vector<32x256xf32>
      %60 = arith.mulf %59, %46 : vector<32x256xf32>
      %61 = arith.addf %58, %60 : vector<32x256xf32>
      %c0_41 = arith.constant 0 : index
      %c2 = arith.constant 2 : index
      %c0_42 = arith.constant 0 : index
      %62 = arith.index_cast %19 : i32 to index
      %63 = vector.load %arg3[%c0_41, %c2, %c0_42, %62] : memref<1x4x32x1024xf32, #tpu.memory_space<vmem>>, vector<1x1x32x256xf32>
      %64 = vector.shape_cast %63 : vector<1x1x32x256xf32> to vector<32x256xf32>
      %cst_43 = arith.constant dense<0.000000e+00> : vector<64x256xf32>
      %65 = tpu.matmul %2, %64, %cst_43 {dimension_numbers = #tpu.dot_dimension_numbers<[1], [0], [0], [1], [0, 0, 1, 1], [], []>} : vector<64x32xf32>, vector<32x256xf32>, vector<64x256xf32> -> vector<64x256xf32>
      %66 = vector.extract_strided_slice %65 {offsets = [0, 0], sizes = [32, 256], strides = [1, 1]} : vector<64x256xf32> to vector<32x256xf32>
      %67 = vector.extract_strided_slice %65 {offsets = [32, 0], sizes = [32, 256], strides = [1, 1]} : vector<64x256xf32> to vector<32x256xf32>
      %68 = arith.mulf %27, %66 : vector<32x256xf32>
      %cst_44 = arith.constant dense<0.000000e+00> : vector<4x256xf32>
      %69 = tpu.matmul %3, %68, %cst_44 {dimension_numbers = #tpu.dot_dimension_numbers<[1], [0], [0], [1], [0, 0, 1, 1], [], []>} : vector<4x32xf32>, vector<32x256xf32>, vector<4x256xf32> -> vector<4x256xf32>
      %70 = arith.addf %69, %30 : vector<4x256xf32>
      %71 = arith.maximumf %50, %70 : vector<4x256xf32>
      %72 = arith.subf %50, %71 : vector<4x256xf32>
      %73 = math.exp %72 : vector<4x256xf32>
      %74 = arith.subf %70, %71 : vector<4x256xf32>
      %75 = math.exp %74 : vector<4x256xf32>
      %76 = arith.mulf %56, %73 : vector<4x256xf32>
      %77 = arith.addf %76, %75 : vector<4x256xf32>
      %cst_45 = arith.constant dense<0.000000e+00> : vector<32x256xf32>
      %78 = tpu.matmul %5, %73, %cst_45 {dimension_numbers = #tpu.dot_dimension_numbers<[1], [0], [0], [1], [0, 0, 1, 1], [], []>} : vector<32x4xf32>, vector<4x256xf32>, vector<32x256xf32> -> vector<32x256xf32>
      %79 = arith.mulf %61, %78 : vector<32x256xf32>
      %cst_46 = arith.constant dense<0.000000e+00> : vector<32x256xf32>
      %80 = tpu.matmul %5, %75, %cst_46 {dimension_numbers = #tpu.dot_dimension_numbers<[1], [0], [0], [1], [0, 0, 1, 1], [], []>} : vector<32x4xf32>, vector<4x256xf32>, vector<32x256xf32> -> vector<32x256xf32>
      %81 = arith.mulf %80, %67 : vector<32x256xf32>
      %82 = arith.addf %79, %81 : vector<32x256xf32>
      %c0_47 = arith.constant 0 : index
      %c3 = arith.constant 3 : index
      %c0_48 = arith.constant 0 : index
      %83 = arith.index_cast %19 : i32 to index
      %84 = vector.load %arg3[%c0_47, %c3, %c0_48, %83] : memref<1x4x32x1024xf32, #tpu.memory_space<vmem>>, vector<1x1x32x256xf32>
      %85 = vector.shape_cast %84 : vector<1x1x32x256xf32> to vector<32x256xf32>
      %cst_49 = arith.constant dense<0.000000e+00> : vector<64x256xf32>
      %86 = tpu.matmul %2, %85, %cst_49 {dimension_numbers = #tpu.dot_dimension_numbers<[1], [0], [0], [1], [0, 0, 1, 1], [], []>} : vector<64x32xf32>, vector<32x256xf32>, vector<64x256xf32> -> vector<64x256xf32>
      %87 = vector.extract_strided_slice %86 {offsets = [0, 0], sizes = [32, 256], strides = [1, 1]} : vector<64x256xf32> to vector<32x256xf32>
      %88 = vector.extract_strided_slice %86 {offsets = [32, 0], sizes = [32, 256], strides = [1, 1]} : vector<64x256xf32> to vector<32x256xf32>
      %89 = arith.mulf %27, %87 : vector<32x256xf32>
      %cst_50 = arith.constant dense<0.000000e+00> : vector<4x256xf32>
      %90 = tpu.matmul %3, %89, %cst_50 {dimension_numbers = #tpu.dot_dimension_numbers<[1], [0], [0], [1], [0, 0, 1, 1], [], []>} : vector<4x32xf32>, vector<32x256xf32>, vector<4x256xf32> -> vector<4x256xf32>
      %91 = arith.addf %90, %30 : vector<4x256xf32>
      %92 = arith.maximumf %71, %91 : vector<4x256xf32>
      %93 = arith.subf %71, %92 : vector<4x256xf32>
      %94 = math.exp %93 : vector<4x256xf32>
      %95 = arith.subf %91, %92 : vector<4x256xf32>
      %96 = math.exp %95 : vector<4x256xf32>
      %97 = arith.mulf %77, %94 : vector<4x256xf32>
      %98 = arith.addf %97, %96 : vector<4x256xf32>
      %cst_51 = arith.constant dense<0.000000e+00> : vector<32x256xf32>
      %99 = tpu.matmul %5, %94, %cst_51 {dimension_numbers = #tpu.dot_dimension_numbers<[1], [0], [0], [1], [0, 0, 1, 1], [], []>} : vector<32x4xf32>, vector<4x256xf32>, vector<32x256xf32> -> vector<32x256xf32>
      %100 = arith.mulf %82, %99 : vector<32x256xf32>
      %cst_52 = arith.constant dense<0.000000e+00> : vector<32x256xf32>
      %101 = tpu.matmul %5, %96, %cst_52 {dimension_numbers = #tpu.dot_dimension_numbers<[1], [0], [0], [1], [0, 0, 1, 1], [], []>} : vector<32x4xf32>, vector<4x256xf32>, vector<32x256xf32> -> vector<32x256xf32>
      %102 = arith.mulf %101, %88 : vector<32x256xf32>
      %103 = arith.addf %100, %102 : vector<32x256xf32>
      %cst_53 = arith.constant 1.000000e+00 : f32
      %104 = vector.broadcast %cst_53 : f32 to vector<4x256xf32>
      %105 = arith.divf %104, %98 : vector<4x256xf32>
      %cst_54 = arith.constant dense<0.000000e+00> : vector<32x256xf32>
      %106 = tpu.matmul %5, %105, %cst_54 {dimension_numbers = #tpu.dot_dimension_numbers<[1], [0], [0], [1], [0, 0, 1, 1], [], []>} : vector<32x4xf32>, vector<4x256xf32>, vector<32x256xf32> -> vector<32x256xf32>
      %107 = arith.mulf %103, %106 : vector<32x256xf32>
      %cst_55 = arith.constant dense<0.000000e+00> : vector<32x256xf32>
      %108 = tpu.matmul %6, %107, %cst_55 {dimension_numbers = #tpu.dot_dimension_numbers<[1], [0], [0], [1], [0, 0, 1, 1], [], []>} : vector<32x32xf32>, vector<32x256xf32>, vector<32x256xf32> -> vector<32x256xf32>
      %109 = vector.broadcast %7 : vector<32x1xf32> to vector<32x256xf32>
      %110 = arith.addf %108, %109 : vector<32x256xf32>
      %111 = arith.addf %110, %26 : vector<32x256xf32>
      %c0_56 = arith.constant 0 : index
      %c0_57 = arith.constant 0 : index
      %112 = arith.index_cast %19 : i32 to index
      %113 = vector.load %arg12[%c0_56, %c0_57, %112] : memref<1x32x1024xf32, #tpu.memory_space<vmem>>, vector<1x32x256xf32>
      %114 = vector.shape_cast %113 : vector<1x32x256xf32> to vector<32x256xf32>
      %115 = vector.shape_cast %111 : vector<32x256xf32> to vector<1x32x256xf32>
      tpu.vector_store %arg12[%c0_56, %c0_57, %112], %115 {strides = array<i32>} : memref<1x32x1024xf32, #tpu.memory_space<vmem>>, vector<1x32x256xf32>,
      %cst_58 = arith.constant dense<0.000000e+00> : vector<32xf32>
      %116 = vector.multi_reduction <add>, %111, %cst_58 [1] : vector<32x256xf32> to vector<32xf32>
      %117 = vector.shape_cast %116 : vector<32xf32> to vector<32x1xf32>
      %118 = arith.mulf %111, %111 : vector<32x256xf32>
      %cst_59 = arith.constant dense<0.000000e+00> : vector<32xf32>
      %119 = vector.multi_reduction <add>, %118, %cst_59 [1] : vector<32x256xf32> to vector<32xf32>
      %120 = vector.shape_cast %119 : vector<32xf32> to vector<32x1xf32>
      %121 = arith.addf %arg15, %117 : vector<32x1xf32>
      %122 = arith.addf %arg16, %120 : vector<32x1xf32>
      scf.yield %121, %122 : vector<32x1xf32>, vector<32x1xf32>
    }
    %c4_i32_16 = arith.constant 4 : i32
    %c0_17 = arith.constant 0 : index
    %c0_18 = arith.constant 0 : index
    %c0_19 = arith.constant 0 : index
    %c0_20 = arith.constant 0 : index
    %12 = vector.load %arg13[%c0_17, %c0_18, %c0_19, %c0_20] : memref<1x1x32x2xf32, #tpu.memory_space<vmem>>, vector<1x1x32x1xf32>
    %13 = vector.shape_cast %12 : vector<1x1x32x1xf32> to vector<32x1xf32>
    %14 = vector.shape_cast %11#0 : vector<32x1xf32> to vector<1x1x32x1xf32>
    tpu.vector_store %arg13[%c0_17, %c0_18, %c0_19, %c0_20], %14 {strides = array<i32>} : memref<1x1x32x2xf32, #tpu.memory_space<vmem>>, vector<1x1x32x1xf32>,
    %c0_21 = arith.constant 0 : index
    %c0_22 = arith.constant 0 : index
    %c0_23 = arith.constant 0 : index
    %c1 = arith.constant 1 : index
    %15 = vector.load %arg13[%c0_21, %c0_22, %c0_23, %c1] : memref<1x1x32x2xf32, #tpu.memory_space<vmem>>, vector<1x1x32x1xf32>
    %16 = vector.shape_cast %15 : vector<1x1x32x1xf32> to vector<32x1xf32>
    %17 = vector.shape_cast %11#1 : vector<32x1xf32> to vector<1x1x32x1xf32>
    tpu.vector_store %arg13[%c0_21, %c0_22, %c0_23, %c1], %17 {strides = array<i32>} : memref<1x1x32x2xf32, #tpu.memory_space<vmem>>, vector<1x1x32x1xf32>,
    return
  }
  func.func @transform_0(%arg0: i32, %arg1: i32) -> (i32, i32, i32) {
    %c0_i32 = arith.constant 0 : i32
    %c0_i32_0 = arith.constant 0 : i32
    return %arg0, %c0_i32, %arg1 : i32, i32, i32
  }
  func.func @transform_1(%arg0: i32, %arg1: i32) -> (i32, i32, i32, i32) {
    %c0_i32 = arith.constant 0 : i32
    %c0_i32_0 = arith.constant 0 : i32
    %c0_i32_1 = arith.constant 0 : i32
    return %arg0, %c0_i32, %c0_i32_0, %arg1 : i32, i32, i32, i32
  }
  func.func @transform_2(%arg0: i32, %arg1: i32) -> (i32, i32) {
    %c0_i32 = arith.constant 0 : i32
    %c0_i32_0 = arith.constant 0 : i32
    %c0_i32_1 = arith.constant 0 : i32
    return %c0_i32, %c0_i32_0 : i32, i32
  }
  func.func @transform_3(%arg0: i32, %arg1: i32) -> (i32, i32) {
    %c0_i32 = arith.constant 0 : i32
    %c0_i32_0 = arith.constant 0 : i32
    %c0_i32_1 = arith.constant 0 : i32
    return %c0_i32, %c0_i32_0 : i32, i32
  }
  func.func @transform_4(%arg0: i32, %arg1: i32) -> (i32, i32) {
    %c0_i32 = arith.constant 0 : i32
    %c0_i32_0 = arith.constant 0 : i32
    %c0_i32_1 = arith.constant 0 : i32
    return %c0_i32, %c0_i32_0 : i32, i32
  }
  func.func @transform_5(%arg0: i32, %arg1: i32) -> (i32, i32) {
    %c0_i32 = arith.constant 0 : i32
    %c0_i32_0 = arith.constant 0 : i32
    %c0_i32_1 = arith.constant 0 : i32
    return %c0_i32, %c0_i32_0 : i32, i32
  }
  func.func @transform_6(%arg0: i32, %arg1: i32) -> (i32, i32) {
    %c0_i32 = arith.constant 0 : i32
    %c0_i32_0 = arith.constant 0 : i32
    %c0_i32_1 = arith.constant 0 : i32
    return %c0_i32, %c0_i32_0 : i32, i32
  }
  func.func @transform_7(%arg0: i32, %arg1: i32) -> (i32, i32) {
    %c0_i32 = arith.constant 0 : i32
    %c0_i32_0 = arith.constant 0 : i32
    %c0_i32_1 = arith.constant 0 : i32
    return %c0_i32, %c0_i32_0 : i32, i32
  }
  func.func @transform_8(%arg0: i32, %arg1: i32) -> (i32, i32) {
    %c0_i32 = arith.constant 0 : i32
    %c0_i32_0 = arith.constant 0 : i32
    %c0_i32_1 = arith.constant 0 : i32
    return %c0_i32, %c0_i32_0 : i32, i32
  }
  func.func @transform_9(%arg0: i32, %arg1: i32) -> (i32, i32) {
    %c0_i32 = arith.constant 0 : i32
    %c0_i32_0 = arith.constant 0 : i32
    %c0_i32_1 = arith.constant 0 : i32
    return %c0_i32, %c0_i32_0 : i32, i32
  }
  func.func @transform_10(%arg0: i32, %arg1: i32) -> (i32, i32, i32) {
    %c0_i32 = arith.constant 0 : i32
    %c0_i32_0 = arith.constant 0 : i32
    return %arg0, %c0_i32, %arg1 : i32, i32, i32
  }
  func.func @transform_11(%arg0: i32, %arg1: i32) -> (i32, i32, i32, i32) {
    %c0_i32 = arith.constant 0 : i32
    %c0_i32_0 = arith.constant 0 : i32
    %c0_i32_1 = arith.constant 0 : i32
    return %arg0, %arg1, %c0_i32, %c0_i32_0 : i32, i32, i32, i32
  }
}

module attributes {stable_mosaic.version = 11 : i64} {
  func.func @_gn_apply_kernel(%arg0: i32, %arg1: i32, %arg2: memref<1x32x1024xf32, #tpu.memory_space<vmem>>, %arg3: memref<1x32x1xf32, #tpu.memory_space<vmem>>, %arg4: memref<1x32x1xf32, #tpu.memory_space<vmem>>, %arg5: memref<1x32x1024xf32, #tpu.memory_space<vmem>>) attributes {dimension_semantics = [#tpu.dimension_semantics<parallel>, #tpu.dimension_semantics<parallel>], iteration_bounds = array<i64: 2, 1>, scalar_prefetch = 0 : i64, scratch_operands = 0 : i64, tpu.core_type = #tpu.core_type<tc>, window_params = [{transform_indices = @transform_0, window_bounds = array<i64: 1, 32, 1024>}, {transform_indices = @transform_1, window_bounds = array<i64: 1, 32, 1>}, {transform_indices = @transform_2, window_bounds = array<i64: 1, 32, 1>}, {transform_indices = @transform_3, window_bounds = array<i64: 1, 32, 1024>}]} {
    %c0 = arith.constant 0 : index
    %c0_0 = arith.constant 0 : index
    %c0_1 = arith.constant 0 : index
    %0 = vector.load %arg2[%c0, %c0_0, %c0_1] : memref<1x32x1024xf32, #tpu.memory_space<vmem>>, vector<1x32x1024xf32>
    %1 = vector.shape_cast %0 : vector<1x32x1024xf32> to vector<32x1024xf32>
    %c0_2 = arith.constant 0 : index
    %c0_3 = arith.constant 0 : index
    %c0_4 = arith.constant 0 : index
    %2 = vector.load %arg3[%c0_2, %c0_3, %c0_4] : memref<1x32x1xf32, #tpu.memory_space<vmem>>, vector<1x32x1xf32>
    %3 = vector.shape_cast %2 : vector<1x32x1xf32> to vector<32x1xf32>
    %4 = vector.broadcast %3 : vector<32x1xf32> to vector<32x1024xf32>
    %5 = arith.mulf %1, %4 : vector<32x1024xf32>
    %c0_5 = arith.constant 0 : index
    %c0_6 = arith.constant 0 : index
    %c0_7 = arith.constant 0 : index
    %6 = vector.load %arg4[%c0_5, %c0_6, %c0_7] : memref<1x32x1xf32, #tpu.memory_space<vmem>>, vector<1x32x1xf32>
    %7 = vector.shape_cast %6 : vector<1x32x1xf32> to vector<32x1xf32>
    %8 = vector.broadcast %7 : vector<32x1xf32> to vector<32x1024xf32>
    %9 = arith.addf %5, %8 : vector<32x1024xf32>
    %c0_8 = arith.constant 0 : index
    %c0_9 = arith.constant 0 : index
    %c0_10 = arith.constant 0 : index
    %10 = vector.load %arg5[%c0_8, %c0_9, %c0_10] : memref<1x32x1024xf32, #tpu.memory_space<vmem>>, vector<1x32x1024xf32>
    %11 = vector.shape_cast %10 : vector<1x32x1024xf32> to vector<32x1024xf32>
    %12 = vector.shape_cast %9 : vector<32x1024xf32> to vector<1x32x1024xf32>
    tpu.vector_store %arg5[%c0_8, %c0_9, %c0_10], %12 {strides = array<i32>} : memref<1x32x1024xf32, #tpu.memory_space<vmem>>, vector<1x32x1024xf32>,
    return
  }
  func.func @transform_0(%arg0: i32, %arg1: i32) -> (i32, i32, i32) {
    %c0_i32 = arith.constant 0 : i32
    %c0_i32_0 = arith.constant 0 : i32
    return %arg0, %c0_i32, %arg1 : i32, i32, i32
  }
  func.func @transform_1(%arg0: i32, %arg1: i32) -> (i32, i32, i32) {
    %c0_i32 = arith.constant 0 : i32
    %c0_i32_0 = arith.constant 0 : i32
    %c0_i32_1 = arith.constant 0 : i32
    return %arg0, %c0_i32, %c0_i32_0 : i32, i32, i32
  }
  func.func @transform_2(%arg0: i32, %arg1: i32) -> (i32, i32, i32) {
    %c0_i32 = arith.constant 0 : i32
    %c0_i32_0 = arith.constant 0 : i32
    %c0_i32_1 = arith.constant 0 : i32
    return %arg0, %c0_i32, %c0_i32_0 : i32, i32, i32
  }
  func.func @transform_3(%arg0: i32, %arg1: i32) -> (i32, i32, i32) {
    %c0_i32 = arith.constant 0 : i32
    %c0_i32_0 = arith.constant 0 : i32
    return %arg0, %c0_i32, %arg1 : i32, i32, i32
  }
}

</mosaic_0001>

<bundles_post_ra>
// kernel: squeeze.2
= control target key start
LH: loop header
LB: loop body
LE: loop exit
PB: predicated region body
PF: predicated region fallthrough
CT: control target
= control target key end

     0   :  { %s66_s8 = smov 116   ;;  %vm7_vm0 = vcmask 31744   ;;  %s67_s11 = smov 120   ;;  %s117_s0 = inlined_call_operand.vmem [shape: f32[2,32], index: 0, kind: input, shape index: {}]   ;;  %s118_s1 = inlined_call_operand.vmem [shape: f32[2,8,4], index: 1, kind: output, shape index: {}]  }
   0x1   :  { %v4_v0 = vld [vmem:[%s117_s0] sm:$0x3]  ;;  %s65_s0 = smov 124   ;;  %s68_s12 = smov 112  }
   0x2   :  { %5 = vst [vmem:[#allocation0] sm:$0x3] %v4_v0  ;;  %s69_s13 = smov 108   ;;  %s70_s14 = smov 104  }
   0x3   :  { %s71_s15 = smov 100  }
   0x9   :  { %v9_v1 = vld [vmem:[#allocation0] sm:$0x3]  }
   0xa   :  { %v21_v2 = vld [vmem:[#allocation0] sm:$0x3]   ;;  %10 = vrot.lane.b32.xlu0 %v9_v1, %s65_s0 }
   0xb   :  { %22 = vrot.lane.b32.xlu1 %v21_v2, %s66_s8  ;;  %v15_v3 = vld [vmem:[#allocation0] sm:$0x3]  }
   0xc   :  { %v27_v4 = vld [vmem:[#allocation0] sm:$0x3]  }
   0xd   :  { %v6_v5 = vld [vmem:[#allocation0] sm:$0x3]  }
   0xe   :  { %8 = vst.msk [vmem:[%s118_s1] ss:$8 sm:$0x3] %vm7_vm0, %v6_v5   ;;  %16 = vrot.lane.b32.xlu0 %v15_v3, %s67_s11  ;;  %v33_v6 = vld [vmem:[#allocation0] sm:$0x3]  }
   0xf   :  { %28 = vrot.lane.b32.xlu1 %v27_v4, %s68_s12  ;;  %v39_v7 = vld [vmem:[#allocation0] sm:$0x3]  }
  0x10   :  { %v45_v8 = vld [vmem:[#allocation0] sm:$0x3]  }
  0x12   :  { %34 = vrot.lane.b32.xlu0 %v33_v6, %s69_s13 }
  0x13   :  { %40 = vrot.lane.b32.xlu1 %v39_v7, %s70_s14 }
  0x16   :  { %46 = vrot.lane.b32.xlu0 %v45_v8, %s71_s15 }
  0x7c   :  { %v11_v9 = vpop.permute.xlu0 %10  }
  0x7d   :  { %v23_v10 = vpop.permute.xlu1 %22   ;;  %51 = vst.msk [vmem:[%s118_s1 + $0x1] ss:$8 sm:$0x3] %vm7_vm0, %v11_v9  }
  0x7e   :  { %53 = vst.msk [vmem:[%s118_s1 + $0x3] ss:$8 sm:$0x3] %vm7_vm0, %v23_v10  }
  0x80   :  { %v17_v11 = vpop.permute.xlu0 %16  }
  0x81   :  { %v29_v12 = vpop.permute.xlu1 %28   ;;  %52 = vst.msk [vmem:[%s118_s1 + $0x2] ss:$8 sm:$0x3] %vm7_vm0, %v17_v11  }
  0x82   :  { %54 = vst.msk [vmem:[%s118_s1 + $0x4] ss:$8 sm:$0x3] %vm7_vm0, %v29_v12  }
  0x84   :  { %v35_v13 = vpop.permute.xlu0 %34  }
  0x85   :  { %v41_v14 = vpop.permute.xlu1 %40   ;;  %55 = vst.msk [vmem:[%s118_s1 + $0x5] ss:$8 sm:$0x3] %vm7_vm0, %v35_v13  }
  0x86   :  { %56 = vst.msk [vmem:[%s118_s1 + $0x6] ss:$8 sm:$0x3] %vm7_vm0, %v41_v14  }
  0x88   :  { %v47_v15 = vpop.permute.xlu0 %46  }
  0x89   :  { %57 = vst.msk [vmem:[%s118_s1 + $0x7] ss:$8 sm:$0x3] %vm7_vm0, %v47_v15  }

// kernel: decoder_cross_attention_2d.3
= control target key start
LH: loop header
LB: loop body
LE: loop exit
PB: predicated region body
PF: predicated region fallthrough
CT: control target
= control target key end

     0   :  { %s628_s12 = smov 0   ;;  %s630_s13 = smov 0   ;;  %s791_s0 = inlined_call_operand.vmem [shape: f32[2,32,1024], index: 0, kind: input, shape index: {}]   ;;  %s792_s1 = inlined_call_operand.vmem [shape: f32[2,32,1], index: 1, kind: input, shape index: {}]   ;;  %s793_s2 = inlined_call_operand.vmem [shape: f32[2,32,1], index: 2, kind: input, shape index: {}]   ;;  %s794_s3 = inlined_call_operand.vmem [shape: f32[2,32,1024], index: 3, kind: output, shape index: {}]  }
   0x1   :  { %s632_s14 = smov 0  }
   0x2 LB: > { %s25_s15 = sadd.s32 1, %s601_s13  ;;  %p541_p0 = scmp.ge.s32.totalorder %s605_s14, 1  ;;  %s605_s14 = sphi %s632_s14, %s13_s14   ;;  %s601_s13 = sphi %s630_s13, %s796_s13   ;;  %s597_s12 = sphi %s628_s12, %s795_s12  }
   0x3   : > { %p27_p1 = scmp.ge.s32.totalorder %s25_s15, 2  ;;  %p178_p2 = scmp.lt.s32.totalorder %s605_s14, 3 }
   0x5   : > { %s798_s15 = smov (%p27_p1, %s25_s15), 0  ;;  %p179_p3 = pnand %p541_p0, %p178_p2 }
   0x6   : > { %p221_p4 = scmp.lt.s32.totalorder (!%p179_p3), %s597_s12, 1  ;;  %v607_v0 = vmov (!%p179_p3), 0  }
   0x7   : > { %182 = sbr.rel (%p179_p3) target bundleno = 172 (0xac), region = 32  ;;  %582 = vset.pattern.permute.xlu1 (!%p179_p3), %v607_v0  ;;  %581 = vset.pattern.permute.xlu0 (!%p179_p3), %v607_v0 }
   0xe   : > { %s800_s12 = smov (!%p221_p4, %s597_s12), 1 }
   0xf   : > { %s553_s16 = sshll.u32 %s800_s12, 5  ;;  %s552_s23 = sshll.u32 %s800_s12, 8 }
  0x10   : > { %s234_s19 = scalar_lea.vmem %s792_s1, %s553_s16  ;;  %s239_s22 = scalar_lea.vmem %s793_s2, %s553_s16 }
  0x11   : > { %v284_v1 = vld [vmem:[%s234_s19 + $0x10] sm:$0xff]  ;;  %v282_v2 = vld [vmem:[%s234_s19] sm:$0xff]  ;;  %v285_v3 = vld [vmem:[%s234_s19 + $0x18] sm:$0xff]  ;;  %s661_s26 = scalar_lea.vmem %s791_s0, %s552_s23  ;;  %s732_s29 = scalar_lea.vmem %s794_s3, %s552_s23 }
  0x12   : > { %298 = vperm.xlu1 %582, %v284_v1   ;;  %288 = vperm.xlu0 %581, %v282_v2   ;;  %v283_v4 = vld [vmem:[%s234_s19 + $0x8] sm:$0xff]  ;;  %v338_v6 = vld [vmem:[%s239_s22] sm:$0xff]  ;;  %v341_v7 = vld [vmem:[%s239_s22 + $0x18] sm:$0xff] }
  0x13   : > { %v339_v5 = vld [vmem:[%s239_s22 + $0x8] sm:$0xff]  ;;  %v340_v8 = vld [vmem:[%s239_s22 + $0x10] sm:$0xff]  ;;  %v250_v9 = vld [vmem:[%s661_s26] sm:$0xff] }
  0x14   : > { %v251_v10 = vld [vmem:[%s661_s26 + $0x8] sm:$0xff]  ;;  %v252_v11 = vld [vmem:[%s661_s26 + $0x10] sm:$0xff]  ;;  %v253_v12 = vld [vmem:[%s661_s26 + $0x18] sm:$0xff] }
  0x15   : > { %v254_v13 = vld [vmem:[%s661_s26 + $0x20] sm:$0xff]  ;;  %v255_v14 = vld [vmem:[%s661_s26 + $0x28] sm:$0xff]  ;;  %v256_v15 = vld [vmem:[%s661_s26 + $0x30] sm:$0xff] }
  0x16   : > { %303 = vperm.xlu1 %582, %v285_v3   ;;  %293 = vperm.xlu0 %581, %v283_v4   ;;  %v257_v16 = vld [vmem:[%s661_s26 + $0x38] sm:$0xff]  ;;  %v266_v17 = vld [vmem:[%s661_s26 + $0x80] sm:$0xff]  ;;  %v267_v18 = vld [vmem:[%s661_s26 + $0x88] sm:$0xff] }
  0x17   : > { %v258_v21 = vld [vmem:[%s661_s26 + $0x40] sm:$0xff]  ;;  %v259_v22 = vld [vmem:[%s661_s26 + $0x48] sm:$0xff]  ;;  %v260_v23 = vld [vmem:[%s661_s26 + $0x50] sm:$0xff] }
  0x18   : > { %v261_v24 = vld [vmem:[%s661_s26 + $0x58] sm:$0xff]  ;;  %v268_v25 = vld [vmem:[%s661_s26 + $0x90] sm:$0xff]  ;;  %v270_v27 = vld [vmem:[%s661_s26 + $0xa0] sm:$0xff] }
  0x19   : > { %v269_v26 = vld [vmem:[%s661_s26 + $0x98] sm:$0xff]  ;;  %v271_v32 = vld [vmem:[%s661_s26 + $0xa8] sm:$0xff]  ;;  %v272_v33 = vld [vmem:[%s661_s26 + $0xb0] sm:$0xff] }
  0x1a   : > { %349 = vperm.xlu1 %582, %v339_v5   ;;  %344 = vperm.xlu0 %581, %v338_v6   ;;  %v273_v34 = vld [vmem:[%s661_s26 + $0xb8] sm:$0xff]  ;;  %v262_v39 = vld [vmem:[%s661_s26 + $0x60] sm:$0xff]  ;;  %v263_v40 = vld [vmem:[%s661_s26 + $0x68] sm:$0xff] }
  0x1b   : > { %v264_v41 = vld [vmem:[%s661_s26 + $0x70] sm:$0xff]  ;;  %v265_v42 = vld [vmem:[%s661_s26 + $0x78] sm:$0xff]  ;;  %v274_v43 = vld [vmem:[%s661_s26 + $0xc0] sm:$0xff] }
  0x1c   : > { %v275_v44 = vld [vmem:[%s661_s26 + $0xc8] sm:$0xff]  ;;  %v276_v51 = vld [vmem:[%s661_s26 + $0xd0] sm:$0xff]  ;;  %v277_v52 = vld [vmem:[%s661_s26 + $0xd8] sm:$0xff] }
  0x1d   : > { %v278_v53 = vld [vmem:[%s661_s26 + $0xe0] sm:$0xff]  ;;  %v279_v62 = vld [vmem:[%s661_s26 + $0xe8] sm:$0xff]  ;;  %v280_v63 = vld [vmem:[%s661_s26 + $0xf0] sm:$0xff] }
  0x1e   : > { %359 = vperm.xlu1 %582, %v341_v7   ;;  %354 = vperm.xlu0 %581, %v340_v8   ;;  %v281_v0 = vld [vmem:[%s661_s26 + $0xf8] sm:$0xff] }
  0x91   : > { %v299_v19 = vpop.permute.xlu1 %298  ;;  %v289_v20 = vpop.permute.xlu0 %288 }
  0x92   : > { %v680_v28 = vmul.f32 %v289_v20, %v250_v9  ;;  %v682_v29 = vmul.f32 %v289_v20, %v251_v10  ;;  %v684_v30 = vmul.f32 %v289_v20, %v252_v11  ;;  %v686_v31 = vmul.f32 %v289_v20, %v253_v12 }
  0x93   : > { %v691_v35 = vmul.f32 %v289_v20, %v254_v13  ;;  %v693_v36 = vmul.f32 %v289_v20, %v255_v14  ;;  %v695_v37 = vmul.f32 %v289_v20, %v256_v15  ;;  %v697_v38 = vmul.f32 %v289_v20, %v257_v16 }
  0x94   : > { %v705_v45 = vmul.f32 %v299_v19, %v266_v17  ;;  %v707_v46 = vmul.f32 %v299_v19, %v267_v18  ;;  %v709_v47 = vmul.f32 %v299_v19, %v268_v25  ;;  %v711_v48 = vmul.f32 %v299_v19, %v269_v26 }
  0x95   : > { %v304_v49 = vpop.permute.xlu1 %303  ;;  %v294_v50 = vpop.permute.xlu0 %293  ;;  %v716_v54 = vmul.f32 %v299_v19, %v270_v27  ;;  %v718_v55 = vmul.f32 %v299_v19, %v271_v32  ;;  %v720_v56 = vmul.f32 %v299_v19, %v272_v33  ;;  %v722_v57 = vmul.f32 %v299_v19, %v273_v34 }
  0x96   : > { %v314_v58 = vmul.f32 %v294_v50, %v258_v21  ;;  %v315_v59 = vmul.f32 %v294_v50, %v259_v22  ;;  %v316_v60 = vmul.f32 %v294_v50, %v260_v23  ;;  %v317_v61 = vmul.f32 %v294_v50, %v261_v24 }
  0x97   : > { %v318_v1 = vmul.f32 %v294_v50, %v262_v39  ;;  %v319_v2 = vmul.f32 %v294_v50, %v263_v40  ;;  %v320_v3 = vmul.f32 %v294_v50, %v264_v41  ;;  %v321_v4 = vmul.f32 %v294_v50, %v265_v42 }
  0x98   : > { %v330_v5 = vmul.f32 %v304_v49, %v274_v43  ;;  %v331_v6 = vmul.f32 %v304_v49, %v275_v44  ;;  %v332_v7 = vmul.f32 %v304_v49, %v276_v51  ;;  %v333_v8 = vmul.f32 %v304_v49, %v277_v52 }
  0x99   : > { %v350_v9 = vpop.permute.xlu1 %349  ;;  %v345_v10 = vpop.permute.xlu0 %344  ;;  %v334_v11 = vmul.f32 %v304_v49, %v278_v53  ;;  %v335_v12 = vmul.f32 %v304_v49, %v279_v62  ;;  %v336_v13 = vmul.f32 %v304_v49, %v280_v63  ;;  %v337_v14 = vmul.f32 %v304_v49, %v281_v0 }
  0x9a   : > { %v370_v15 = vadd.f32 %v350_v9, %v314_v58  ;;  %v371_v16 = vadd.f32 %v350_v9, %v315_v59  ;;  %v372_v17 = vadd.f32 %v350_v9, %v316_v60  ;;  %v373_v18 = vadd.f32 %v350_v9, %v317_v61 }
  0x9b   : > { %v374_v19 = vadd.f32 %v350_v9, %v318_v1  ;;  %v375_v20 = vadd.f32 %v350_v9, %v319_v2  ;;  %v376_v21 = vadd.f32 %v350_v9, %v320_v3  ;;  %v377_v22 = vadd.f32 %v350_v9, %v321_v4 }
  0x9c   : > { %402 = vst [vmem:[%s732_s29 + $0x40] sm:$0xff] %v370_v15  ;;  %403 = vst [vmem:[%s732_s29 + $0x48] sm:$0xff] %v371_v16  ;;  %v362_v23 = vadd.f32 %v345_v10, %v680_v28  ;;  %v363_v24 = vadd.f32 %v345_v10, %v682_v29  ;;  %v364_v25 = vadd.f32 %v345_v10, %v684_v30 }
  0x9d   : > { %404 = vst [vmem:[%s732_s29 + $0x50] sm:$0xff] %v372_v17  ;;  %405 = vst [vmem:[%s732_s29 + $0x58] sm:$0xff] %v373_v18  ;;  %v365_v26 = vadd.f32 %v345_v10, %v686_v31  ;;  %v366_v27 = vadd.f32 %v345_v10, %v691_v35  ;;  %v367_v32 = vadd.f32 %v345_v10, %v693_v36  ;;  %v360_v33 = vpop.permute.xlu1 %359  ;;  %v355_v30 = vpop.permute.xlu0 %354 }
  0x9e   : > { %406 = vst [vmem:[%s732_s29 + $0x60] sm:$0xff] %v374_v19  ;;  %407 = vst [vmem:[%s732_s29 + $0x68] sm:$0xff] %v375_v20  ;;  %v368_v28 = vadd.f32 %v345_v10, %v695_v37  ;;  %v369_v29 = vadd.f32 %v345_v10, %v697_v38  ;;  %v386_v31 = vadd.f32 %v360_v33, %v330_v5 }
  0x9f   : > { %408 = vst [vmem:[%s732_s29 + $0x70] sm:$0xff] %v376_v21  ;;  %409 = vst [vmem:[%s732_s29 + $0x78] sm:$0xff] %v377_v22  ;;  %v387_v34 = vadd.f32 %v360_v33, %v331_v6  ;;  %v388_v35 = vadd.f32 %v360_v33, %v332_v7  ;;  %v389_v39 = vadd.f32 %v360_v33, %v333_v8 }
  0xa0   : > { %394 = vst [vmem:[%s732_s29] sm:$0xff] %v362_v23  ;;  %395 = vst [vmem:[%s732_s29 + $0x8] sm:$0xff] %v363_v24  ;;  %v390_v36 = vadd.f32 %v360_v33, %v334_v11  ;;  %v391_v37 = vadd.f32 %v360_v33, %v335_v12  ;;  %v392_v38 = vadd.f32 %v360_v33, %v336_v13 }
  0xa1   : > { %396 = vst [vmem:[%s732_s29 + $0x10] sm:$0xff] %v364_v25  ;;  %397 = vst [vmem:[%s732_s29 + $0x18] sm:$0xff] %v365_v26  ;;  %v393_v40 = vadd.f32 %v360_v33, %v337_v14  ;;  %v378_v41 = vadd.f32 %v355_v30, %v705_v45  ;;  %v379_v42 = vadd.f32 %v355_v30, %v707_v46 }
  0xa2   : > { %398 = vst [vmem:[%s732_s29 + $0x20] sm:$0xff] %v366_v27  ;;  %399 = vst [vmem:[%s732_s29 + $0x28] sm:$0xff] %v367_v32  ;;  %v380_v43 = vadd.f32 %v355_v30, %v709_v47  ;;  %v381_v44 = vadd.f32 %v355_v30, %v711_v48  ;;  %v382_v49 = vadd.f32 %v355_v30, %v716_v54 }
  0xa3   : > { %400 = vst [vmem:[%s732_s29 + $0x30] sm:$0xff] %v368_v28  ;;  %401 = vst [vmem:[%s732_s29 + $0x38] sm:$0xff] %v369_v29  ;;  %v383_v50 = vadd.f32 %v355_v30, %v718_v55  ;;  %v384_v45 = vadd.f32 %v355_v30, %v720_v56  ;;  %v385_v51 = vadd.f32 %v355_v30, %v722_v57 }
  0xa4   : > { %418 = vst [vmem:[%s732_s29 + $0xc0] sm:$0xff] %v386_v31  ;;  %419 = vst [vmem:[%s732_s29 + $0xc8] sm:$0xff] %v387_v34 }
  0xa5   : > { %420 = vst [vmem:[%s732_s29 + $0xd0] sm:$0xff] %v388_v35  ;;  %421 = vst [vmem:[%s732_s29 + $0xd8] sm:$0xff] %v389_v39 }
  0xa6   : > { %422 = vst [vmem:[%s732_s29 + $0xe0] sm:$0xff] %v390_v36  ;;  %423 = vst [vmem:[%s732_s29 + $0xe8] sm:$0xff] %v391_v37 }
  0xa7   : > { %424 = vst [vmem:[%s732_s29 + $0xf0] sm:$0xff] %v392_v38  ;;  %425 = vst [vmem:[%s732_s29 + $0xf8] sm:$0xff] %v393_v40 }
  0xa8   : > { %410 = vst [vmem:[%s732_s29 + $0x80] sm:$0xff] %v378_v41  ;;  %411 = vst [vmem:[%s732_s29 + $0x88] sm:$0xff] %v379_v42 }
  0xa9   : > { %412 = vst [vmem:[%s732_s29 + $0x90] sm:$0xff] %v380_v43  ;;  %413 = vst [vmem:[%s732_s29 + $0x98] sm:$0xff] %v381_v44 }
  0xaa   : > { %414 = vst [vmem:[%s732_s29 + $0xa0] sm:$0xff] %v382_v49  ;;  %415 = vst [vmem:[%s732_s29 + $0xa8] sm:$0xff] %v383_v50 }
  0xab   : > { %416 = vst [vmem:[%s732_s29 + $0xb0] sm:$0xff] %v384_v45  ;;  %417 = vst [vmem:[%s732_s29 + $0xb8] sm:$0xff] %v385_v51 }
  0xac PF: > { %s13_s14 = sadd.s32 1, %s605_s14   ;;  %s795_s12 = smov %s601_s13 }
  0xad   : > { %p10_p5 = scmp.ge.s32.totalorder %s13_s14, 4   ;;  %s796_s13 = smov %s798_s15 }
  0xaf   :  { %12 = sbr.rel (!%p10_p5) target bundleno = 2 (0x2), region = 68 }

// kernel: decoder_cross_attention_2d.2
= control target key start
LH: loop header
LB: loop body
LE: loop exit
PB: predicated region body
PF: predicated region fallthrough
CT: control target
= control target key end

     0   :  { %s3408_s17 = smov 0   ;;  %s3410_s18 = smov 0   ;;  %s4382_s0 = inlined_call_operand.vmem [shape: f32[2,16,1024], index: 0, kind: input, shape index: {}]   ;;  %s4383_s1 = inlined_call_operand.vmem [shape: f32[2,4,32,1024], index: 1, kind: input, shape index: {}]   ;;  %s4384_s2 = inlined_call_operand.vmem [shape: f32[64,16], index: 2, kind: input, shape index: {}]   ;;  %s4385_s3 = inlined_call_operand.vmem [shape: f32[64,1], index: 3, kind: input, shape index: {}]   ;;  %s4386_s4 = inlined_call_operand.vmem [shape: f32[64,32], index: 4, kind: input, shape index: {}]   ;;  %s4387_s5 = inlined_call_operand.vmem [shape: f32[4,32], index: 5, kind: input, shape index: {}]   ;;  %s4388_s6 = inlined_call_operand.vmem [shape: f32[32,1], index: 6, kind: input, shape index: {}]   ;;  %s4389_s7 = inlined_call_operand.vmem [shape: f32[32,4], index: 7, kind: input, shape index: {}]   ;;  %s4390_s8 = inlined_call_operand.vmem [shape: f32[32,32], index: 8, kind: input, shape index: {}]   ;;  %s4391_s9 = inlined_call_operand.vmem [shape: f32[32,1], index: 9, kind: input, shape index: {}]   ;;  %s4392_s10 = inlined_call_operand.vmem [shape: f32[2,32,1024], index: 10, kind: output, shape index: {0}]   ;;  %s4393_s11 = inlined_call_operand.vmem [shape: f32[2,1,32,2], index: 11, kind: output, shape index: {1}]  }
   0x1   :  { %s3412_s19 = smov 0  }
   0x2 LB: > { %s34_s20 = sadd.s32 1, %s3304_s18  ;;  %p2875_p0 = scmp.ge.s32.totalorder %s3308_s19, 1  ;;  %s3308_s19 = sphi %s3412_s19, %s22_s19   ;;  %s3304_s18 = sphi %s3410_s18, %s4512_s18   ;;  %s3300_s17 = sphi %s3408_s17, %s4511_s17  }
   0x3   : > { %p36_p1 = scmp.ge.s32.totalorder %s34_s20, 2  ;;  %p380_p2 = scmp.lt.s32.totalorder %s3308_s19, 3 }
   0x5   : > { %s4514_s20 = smov (%p36_p1, %s34_s20), 0  ;;  %p381_p3 = pnand %p2875_p0, %p380_p2 }
   0x7   : > { %384 = sbr.rel (%p381_p3) target bundleno = 2175 (0x87f), region = 60 }
   0xe   : > { %p447_p4 = scmp.lt.s32.totalorder %s3300_s17, 1  ;;  %v3429_v0 = vld [vmem:[%s4384_s2] sm:$0xff]  ;;  %v3434_v1 = vld [vmem:[%s4384_s2 + $0x8] sm:$0xff]  ;;  %v3439_v2 = vld [vmem:[%s4384_s2 + $0x10] sm:$0xff]  ;;  %v3651_v41 = vmov 0.0   ;;  %v3653_v42 = vmov 0.0  }
   0xf   : > { %4404 = vst [vmem:[#allocation2_spill] sm:$0xff] %v3429_v0  ;;  %4405 = vst [vmem:[#allocation3_spill] sm:$0xff] %v3434_v1  ;;  %v3444_v3 = vld [vmem:[%s4384_s2 + $0x18] sm:$0xff]  ;;  %v3449_v4 = vld [vmem:[%s4384_s2 + $0x20] sm:$0xff]  ;;  %v3655_v43 = vmov 0.0   ;;  %v3657_v44 = vmov 0.0  }
  0x10   : > { %4406 = vst [vmem:[#allocation4_spill] sm:$0xff] %v3439_v2  ;;  %4407 = vst [vmem:[#allocation5_spill] sm:$0xff] %v3444_v3  ;;  %v3454_v5 = vld [vmem:[%s4384_s2 + $0x28] sm:$0xff]  ;;  %s4516_s17 = smov (!%p447_p4, %s3300_s17), 1  ;;  %v3459_v6 = vld [vmem:[%s4384_s2 + $0x30] sm:$0xff]  ;;  %v3659_v45 = vmov 0.0  }
  0x11   : > { %4408 = vst [vmem:[#allocation6_spill] sm:$0xff] %v3449_v4  ;;  %4409 = vst [vmem:[#allocation7_spill] sm:$0xff] %v3454_v5  ;;  %v3464_v7 = vld [vmem:[%s4384_s2 + $0x38] sm:$0xff]  ;;  %v3469_v8 = vld [vmem:[%s4385_s3] sm:$0xff]  ;;  %s3008_s30 = sshll.u32 %s4516_s17, 7  ;;  %s3009_s12 = sshll.u32 %s4516_s17, 10 }
  0x12   : > { %4410 = vst [vmem:[#allocation8_spill] sm:$0xff] %v3459_v6  ;;  %4411 = vst [vmem:[#allocation9_spill] sm:$0xff] %v3464_v7  ;;  %v3474_v9 = vld [vmem:[%s4385_s3 + $0x8] sm:$0xff]  ;;  %v3479_v10 = vld [vmem:[%s4385_s3 + $0x10] sm:$0xff]  ;;  %s3504_s25 = scalar_lea.vmem %s4382_s0, %s3008_s30  ;;  %s3509_s28 = scalar_lea.vmem %s4383_s1, %s3009_s12  ;;  %v3661_v46 = vmov 0.0   ;;  %v3663_v47 = vmov 0.0  }
  0x13   : > { %4412 = vst [vmem:[#allocation10_spill] sm:$0xff] %v3469_v8  ;;  %4413 = vst [vmem:[#allocation11_spill] sm:$0xff] %v3474_v9  ;;  %v3484_v11 = vld [vmem:[%s4385_s3 + $0x18] sm:$0xff]  ;;  %v3489_v12 = vld [vmem:[%s4385_s3 + $0x20] sm:$0xff]  ;;  %s3010_s30 = sshll.u32 %s4516_s17, 8  ;;  %s3011_s22 = sshll.u32 %s4516_s17, 5 }
  0x14   : > { %4414 = vst [vmem:[#allocation12_spill] sm:$0xff] %v3479_v10  ;;  %4415 = vst [vmem:[#allocation13_spill] sm:$0xff] %v3484_v11  ;;  %v3494_v13 = vld [vmem:[%s4385_s3 + $0x28] sm:$0xff]  ;;  %v3499_v14 = vld [vmem:[%s4385_s3 + $0x30] sm:$0xff]  ;;  %s3544_s15 = scalar_lea.vmem %s4392_s10, %s3010_s30  ;;  %s3549_s21 = scalar_lea.vmem %s4393_s11, %s3011_s22  ;;  %v3665_v48 = vmov 0.0  }
  0x15   : > { %4416 = vst [vmem:[#allocation14_spill] sm:$0xff] %v3489_v12  ;;  %4417 = vst [vmem:[#allocation15_spill] sm:$0xff] %v3494_v13  ;;  %v3514_v15 = vld [vmem:[%s4385_s3 + $0x38] sm:$0xff]  ;;  %v3519_v16 = vld [vmem:[%s4386_s4] sm:$0xff]  ;;  %s3667_s27 = smov 0  }
  0x16   : > { %4418 = vst [vmem:[#allocation16_spill] sm:$0xff] %v3499_v14  ;;  %4419 = vst [vmem:[#allocation17_spill] sm:$0xff] %v3514_v15  ;;  %v3524_v17 = vld [vmem:[%s4386_s4 + $0x8] sm:$0xff]  ;;  %v3529_v18 = vld [vmem:[%s4386_s4 + $0x10] sm:$0xff] }
  0x17   : > { %4420 = vst [vmem:[#allocation18_spill] sm:$0xff] %v3519_v16  ;;  %4421 = vst [vmem:[#allocation19_spill] sm:$0xff] %v3524_v17  ;;  %v3534_v19 = vld [vmem:[%s4386_s4 + $0x18] sm:$0xff]  ;;  %v3539_v20 = vld [vmem:[%s4386_s4 + $0x20] sm:$0xff] }
  0x18   : > { %4422 = vst [vmem:[#allocation20_spill] sm:$0xff] %v3529_v18  ;;  %4423 = vst [vmem:[#allocation21_spill] sm:$0xff] %v3534_v19  ;;  %v3554_v21 = vld [vmem:[%s4386_s4 + $0x28] sm:$0xff]  ;;  %v3559_v22 = vld [vmem:[%s4386_s4 + $0x30] sm:$0xff] }
  0x19   : > { %4424 = vst [vmem:[#allocation22_spill] sm:$0xff] %v3539_v20  ;;  %4425 = vst [vmem:[#allocation23_spill] sm:$0xff] %v3554_v21  ;;  %v3564_v23 = vld [vmem:[%s4386_s4 + $0x38] sm:$0xff]  ;;  %v3569_v24 = vld [vmem:[%s4387_s5] sm:$0xf] }
  0x1a   : > { %4426 = vst [vmem:[#allocation24_spill] sm:$0xff] %v3559_v22  ;;  %4427 = vst [vmem:[#allocation25_spill] sm:$0xff] %v3564_v23  ;;  %v3574_v25 = vld [vmem:[%s4388_s6] sm:$0xff]  ;;  %v3579_v26 = vld [vmem:[%s4388_s6 + $0x8] sm:$0xff] }
  0x1b   : > { %4428 = vst [vmem:[#allocation26_spill] sm:$0xff] %v3574_v25  ;;  %4429 = vst [vmem:[#allocation27_spill] sm:$0xff] %v3579_v26  ;;  %v3584_v27 = vld [vmem:[%s4388_s6 + $0x10] sm:$0xff]  ;;  %v3589_v28 = vld [vmem:[%s4388_s6 + $0x18] sm:$0xff] }
  0x1c   : > { %4430 = vst [vmem:[#allocation28_spill] sm:$0xff] %v3584_v27  ;;  %4431 = vst [vmem:[#allocation29_spill] sm:$0xff] %v3589_v28  ;;  %v3594_v29 = vld [vmem:[%s4389_s7] sm:$0xff]  ;;  %v3599_v30 = vld [vmem:[%s4389_s7 + $0x8] sm:$0xff] }
  0x1d   : > { %v3604_v31 = vld [vmem:[%s4389_s7 + $0x10] sm:$0xff]  ;;  %v3609_v32 = vld [vmem:[%s4389_s7 + $0x18] sm:$0xff]  ;;  %v3614_v33 = vld [vmem:[%s4390_s8] sm:$0xff] }
  0x1e   : > { %4432 = vst [vmem:[#allocation30_spill] sm:$0xff] %v3614_v33  ;;  %v3619_v34 = vld [vmem:[%s4390_s8 + $0x8] sm:$0xff]  ;;  %v3624_v35 = vld [vmem:[%s4390_s8 + $0x10] sm:$0xff]  ;;  %v3629_v36 = vld [vmem:[%s4390_s8 + $0x18] sm:$0xff] }
  0x1f   : > { %4433 = vst [vmem:[#allocation31_spill] sm:$0xff] %v3619_v34  ;;  %4434 = vst [vmem:[#allocation32_spill] sm:$0xff] %v3624_v35  ;;  %v3634_v37 = vld [vmem:[%s4391_s9] sm:$0xff]  ;;  %v3639_v38 = vld [vmem:[%s4391_s9 + $0x8] sm:$0xff] }
  0x20   : > { %4435 = vst [vmem:[#allocation33_spill] sm:$0xff] %v3629_v36  ;;  %4436 = vst [vmem:[#allocation34_spill] sm:$0xff] %v3634_v37  ;;  %v3644_v39 = vld [vmem:[%s4391_s9 + $0x10] sm:$0xff]  ;;  %v3649_v40 = vld [vmem:[%s4391_s9 + $0x18] sm:$0xff] }
  0x21   : > { %4437 = vst [vmem:[#allocation35_spill] sm:$0xff] %v3639_v38  ;;  %4438 = vst [vmem:[#allocation36_spill] sm:$0xff] %v3644_v39 }
  0x22   : > { %4439 = vst [vmem:[#allocation37_spill] sm:$0xff] %v3649_v40 }
  0x23 LB: >> { %v4440_v23 = vld [vmem:[#allocation25_spill] sm:$0xff]  ;;  %v4441_v22 = vld [vmem:[#allocation24_spill] sm:$0xff]  ;;  %v4442_v21 = vld [vmem:[#allocation23_spill] sm:$0xff]  ;;  %4448 = vst [vmem:[#allocation38_spill] sm:$0xff] %v3312_v41  ;;  %v4394_v49 = vmov 0.0   ;;  %s2884_s29 = sshll.u32 %s3344_s27, 8  ;;  %v3340_v48 = vphi %v3665_v48, %v4510_v48   ;;  %v3336_v47 = vphi %v3663_v47, %v4509_v47   ;;  %v3332_v46 = vphi %v3661_v46, %v4508_v46   ;;  %v3328_v45 = vphi %v3659_v45, %v4507_v45   ;;  %v3324_v44 = vphi %v3657_v44, %v4506_v44   ;;  %v3320_v43 = vphi %v3655_v43, %v4505_v43   ;;  %v3316_v42 = vphi %v3653_v42, %v4504_v42   ;;  %v3312_v41 = vphi %v3651_v41, %v4503_v41   ;;  %s3344_s27 = sphi %s3667_s27, %s531_s27  }
  0x24   : >> { %v4443_v20 = vld [vmem:[#allocation22_spill] sm:$0xff]  ;;  %v4444_v19 = vld [vmem:[#allocation21_spill] sm:$0xff]  ;;  %v4445_v18 = vld [vmem:[#allocation20_spill] sm:$0xff]  ;;  %4449 = vst [vmem:[#allocation39_spill] sm:$0xff] %v3316_v42  ;;  %678 = vmatprep.mubr.f32.mxu0 %v4394_v49  ;;  %714 = vmatprep.mubr.f32.mxu1 %v4394_v49  ;;  %v3347_v50 = vmov 0   ;;  %s541_s30 = sshra.s32 %s2884_s29, 7 }
  0x25   : >> { %v4446_v17 = vld [vmem:[#allocation19_spill] sm:$0xff]  ;;  %v4447_v16 = vld [vmem:[#allocation18_spill] sm:$0xff]  ;;  %4450 = vst [vmem:[#allocation40_spill] sm:$0xff] %v3320_v43  ;;  %4451 = vst [vmem:[#allocation41_spill] sm:$0xff] %v3324_v44  ;;  %3221 = vset.pattern.permute.xlu1 %v3347_v50  ;;  %3220 = vset.pattern.permute.xlu0 %v3347_v50  ;;  %s3701_s13 = sshll.u32 %s541_s30, 3  ;;  %vm589_vm0 = vcmask 130048  }
  0x26   : >> { %4452 = vst [vmem:[#allocation42_spill] sm:$0xff] %v3328_v45  ;;  %4453 = vst [vmem:[#allocation43_spill] sm:$0xff] %v3332_v46  ;;  %v4456_v25 = vld [vmem:[#allocation26_spill] sm:$0xff]  ;;  %s544_s22 = scalar_lea.vmem %s3504_s25, %s3701_s13  ;;  %v4458_v26 = vld [vmem:[#allocation27_spill] sm:$0xff]  ;;  %s3762_s14 = scalar_lea.vmem %s3509_s28, %s3701_s13  ;;  %vm755_vm1 = vcmask 261120   ;;  %vm1288_vm2 = vcmask 1043456  }
  0x27   : >> { %4454 = vst [vmem:[#allocation44_spill] sm:$0xff] %v3336_v47  ;;  %4455 = vst [vmem:[#allocation45_spill] sm:$0xff] %v3340_v48  ;;  %729 = vperm.xlu1 %3221, %v4456_v25   ;;  %v4457_v12 = vld [vmem:[#allocation14_spill] sm:$0xff]  ;;  %v546_v51 = vld [vmem:[%s544_s22 + $0x8] sm:$0xff]  ;;  %vm1275_vm3 = vcmask 31744   ;;  %s4328_s17 = scalar_lea.vmem %s3544_s15, %s3701_s13  ;;  %s531_s27 = sadd.s32 1, %s3344_s27  }
  0x28   : >> { %571 = vperm.xlu0 %3220, %v4457_v12   ;;  %v548_v52 = vld [vmem:[%s544_s22 + $0x48] sm:$0xff]  ;;  %v545_v53 = vld [vmem:[%s544_s22] sm:$0xff]  ;;  %v4460_v15 = vld [vmem:[#allocation17_spill] sm:$0xff]  ;;  %p528_p5 = scmp.ge.s32.totalorder %s531_s27, 4  }
  0x29   : >> { %v3012_v54 = vpack.c.bf16 %v548_v52, %v546_v51  ;;  %v547_v55 = vld [vmem:[%s544_s22 + $0x40] sm:$0xff]  ;;  %v4459_v13 = vld [vmem:[#allocation15_spill] sm:$0xff]  ;;  %v4461_v14 = vld [vmem:[#allocation16_spill] sm:$0xff]  ;;  %vm2659_vm4 = vcmask (%p528_p5), 7168   ;;  %vm2664_vm5 = vcmask (%p528_p5), 15368  }
  0x2a   : >> { %v3014_v56 = vpack.c.bf16 %v547_v55, %v545_v53  ;;  %v4462_v0 = vld [vmem:[#allocation2_spill] sm:$0xff]  ;;  %v4463_v6 = vld [vmem:[#allocation8_spill] sm:$0xff]  ;;  %v4464_v28 = vld [vmem:[#allocation29_spill] sm:$0xff] }
  0x2b   : >> { %734 = vperm.xlu1 %3221, %v4458_v26   ;;  %3013 = vmatprep.subr.bf16.mxu0 %v3012_v54  ;;  %v4465_v27 = vld [vmem:[#allocation28_spill] sm:$0xff]  ;;  %v4466_v1 = vld [vmem:[#allocation3_spill] sm:$0xff]  ;;  %v4467_v7 = vld [vmem:[#allocation9_spill] sm:$0xff] }
  0x2c   : >> { %576 = vperm.xlu0 %3220, %v4459_v13   ;;  %3096 = vmatprep.subr.bf16.mxu1 %v3012_v54  ;;  %v4468_v9 = vld [vmem:[#allocation11_spill] sm:$0xff]  ;;  %v4469_v8 = vld [vmem:[#allocation10_spill] sm:$0xff]  ;;  %v4470_v2 = vld [vmem:[#allocation4_spill] sm:$0xff] }
  0x2d   : >> { %3015 = vmatpush1.bf16.msra.mxu0 %v3014_v56  ;;  %3097 = vmatpush1.bf16.msra.mxu1 %v3014_v56  ;;  %v4471_v11 = vld [vmem:[#allocation13_spill] sm:$0xff]  ;;  %v4472_v10 = vld [vmem:[#allocation12_spill] sm:$0xff]  ;;  %v4474_v38 = vld [vmem:[#allocation35_spill] sm:$0xff] }
  0x2e   : >> { %v4473_v3 = vld [vmem:[#allocation5_spill] sm:$0xff]  ;;  %v4475_v37 = vld [vmem:[#allocation34_spill] sm:$0xff]  ;;  %v4478_v39 = vld [vmem:[#allocation36_spill] sm:$0xff] }
  0x2f   : >> { %586 = vperm.xlu1 %3221, %v4460_v15   ;;  %v4476_v4 = vld [vmem:[#allocation6_spill] sm:$0xff]  ;;  %v4477_v40 = vld [vmem:[#allocation37_spill] sm:$0xff]  ;;  %v4479_v5 = vld [vmem:[#allocation7_spill] sm:$0xff] }
  0x30   : >> { %581 = vperm.xlu0 %3220, %v4461_v14   ;;  %2886 = vmatmul.mubr.msk.f32.vlgmr.msra.gmra.mrb[0].mxu0 %vm589_vm0, %v4462_v0  ;;  %v839_v13 = vld [vmem:[%s3762_s14 + $0xc8] sm:$0xff] }
  0x31   : >> { %2892 = vmatmul.mubr.msk.f32.vlgmr.msra.gmra.mrb[0].mxu1 %vm589_vm0, %v4463_v6  ;;  %684 = vmatprep.mubr.f32.mxu0 %v4394_v49 }
  0x32   : >> { %720 = vmatprep.mubr.f32.mxu1 %v4394_v49 }
  0x33   : >> { %744 = vperm.xlu1 %3221, %v4464_v28  }
  0x34   : >> { %739 = vperm.xlu0 %3220, %v4465_v27   ;;  %2887 = vmatmul.mubr.msk.f32.gmra.mrb[2].mxu0 %vm589_vm0, %v4466_v1 }
  0x35   : >> { %2893 = vmatmul.mubr.msk.f32.gmra.mrb[2].mxu1 %vm589_vm0, %v4467_v7  ;;  %690 = vmatprep.mubr.f32.mxu0 %v4394_v49 }
  0x36   : >> { %823 = vmatprep.mubr.f32.mxu1 %v4394_v49 }
  0x37   : >> { %556 = vperm.xlu1 %3221, %v4468_v9  }
  0x38   : >> { %551 = vperm.xlu0 %3220, %v4469_v8   ;;  %2888 = vmatmul.mubr.msk.f32.gmra.mrb[4].mxu0 %vm589_vm0, %v4470_v2 }
  0x39   : >> { %696 = vmatprep.mubr.f32.mxu0 %v4394_v49 }
  0x3b   : >> { %566 = vperm.xlu1 %3221, %v4471_v11   ;;  %v834_v11 = vld [vmem:[%s3762_s14 + $0x40] sm:$0xff] }
  0x3c   : >> { %561 = vperm.xlu0 %3220, %v4472_v10   ;;  %2889 = vmatmul.mubr.msk.f32.gmra.mrb[6].mxu0 %vm589_vm0, %v4473_v3  ;;  %v832_v10 = vld [vmem:[%s3762_s14] sm:$0xff] }
  0x3d   : >> { %702 = vmatprep.mubr.f32.mxu0 %v4394_v49 }
  0x3f   : >> { %2487 = vperm.xlu1 %3221, %v4474_v38  }
  0x40   : >> { %2482 = vperm.xlu0 %3220, %v4475_v37   ;;  %2890 = vmatmul.mubr.msk.f32.gmra.mrb[8].mxu0 %vm589_vm0, %v4476_v4 }
  0x41   : >> { %708 = vmatprep.mubr.f32.mxu0 %v4394_v49 }
  0x43   : >> { %2497 = vperm.xlu1 %3221, %v4477_v40  }
  0x44   : >> { %2492 = vperm.xlu0 %3220, %v4478_v39   ;;  %2891 = vmatmul.mubr.msk.f32.gmra.mrb[10].mxu0 %vm589_vm0, %v4479_v5 }
  0x45   : >> { %1049 = vmatprep.mubr.f32.mxu0 %v4394_v49 }
  0xa6   : >> { %v730_v59 = vpop.permute.xlu1 %729 }
  0xa7   : >> { %v572_v61 = vpop.permute.xlu0 %571 }
  0xaa   : >> { %v735_v63 = vpop.permute.xlu1 %734 }
  0xab   : >> { %v577_v50 = vpop.permute.xlu0 %576 }
  0xae   : >> { %v587_v51 = vpop.permute.xlu1 %586 }
  0xaf   : >> { %v582_v53 = vpop.permute.xlu0 %581 }
  0xb2   : >> { %v745_v5 = vpop.permute.xlu1 %744 }
  0xb3   : >> { %v740_v6 = vpop.permute.xlu0 %739 }
 0x104   : >> { %v716_v57 = vpop.f32.mrb[0].mxu1 }
 0x105   : >> { %v718_v58 = vpop.f32.mrb[1].mxu1  ;;  %v3755_v7 = vadd.f32 %v716_v57, %v582_v53 }
 0x106   : >> { %v3743_v55 = vadd.f32 %v718_v58, %v582_v53  ;;  %v833_v53 = vld [vmem:[%s3762_s14 + $0x8] sm:$0xff] }
 0x108   : >> { %v722_v60 = vpop.f32.mrb[2].mxu1 }
 0x109   : >> { %v724_v62 = vpop.f32.mrb[3].mxu1  ;;  %v3757_v8 = vadd.f32 %v722_v60, %v587_v51 }
 0x10a   : >> { %v3745_v56 = vadd.f32 %v724_v62, %v587_v51  ;;  %v751_v51 = vmul.f32 %v740_v6, %v3755_v7 }
 0x10c   : >> { %v754_v62 = vmul.f32 %v745_v5, %v3745_v56 }
 0x113   : >> { %v704_v52 = vpop.f32.mrb[8].mxu0 }
 0x114   : >> { %v706_v54 = vpop.f32.mrb[9].mxu0  ;;  %v3749_v1 = vadd.f32 %v704_v52, %v572_v61  ;;  %v753_v52 = vmul.f32 %v745_v5, %v3757_v8  ;;  %v836_v5 = vld [vmem:[%s3762_s14 + $0x80] sm:$0xff] }
 0x115   : >> { %v3747_v0 = vadd.f32 %v706_v54, %v572_v61  ;;  %v835_v54 = vld [vmem:[%s3762_s14 + $0x48] sm:$0xff] }
 0x116   : >> { %v747_v57 = vmul.f32 %v730_v59, %v3749_v1  ;;  %v3024_v9 = vpack.c.bf16 %v835_v54, %v833_v53  ;;  %v3022_v12 = vpack.c.bf16 %v753_v52, %v751_v51 }
 0x117   : >> { %v710_v49 = vpop.f32.mrb[10].mxu0  ;;  %v748_v61 = vmul.f32 %v730_v59, %v3747_v0  ;;  %v837_v59 = vld [vmem:[%s3762_s14 + $0x88] sm:$0xff] }
 0x118   : >> { %v3751_v2 = vadd.f32 %v710_v49, %v577_v50  ;;  %v712_v3 = vpop.f32.mrb[11].mxu0 }
 0x119   : >> { %v3753_v4 = vadd.f32 %v712_v3, %v577_v50  ;;  %v752_v3 = vmul.f32 %v740_v6, %v3743_v55  ;;  %v3028_v6 = vpack.c.bf16 %v839_v13, %v837_v59 }
 0x11a   : >> { %v749_v58 = vmul.f32 %v735_v63, %v3751_v2 }
 0x11b   : >> { %v750_v49 = vmul.f32 %v735_v63, %v3753_v4  ;;  %v3020_v63 = vpack.c.bf16 %v754_v62, %v752_v3  ;;  %v4480_v3 = vmov 0.0  }
 0x11c   : >> { %v3018_v50 = vpack.c.bf16 %v749_v58, %v747_v57  ;;  %v3026_v58 = vpack.c.bf16 %v834_v11, %v832_v10 }
 0x11d   : >> { %v3016_v60 = vpack.c.bf16 %v750_v49, %v748_v61  ;;  %v838_v61 = vld [vmem:[%s3762_s14 + $0xc0] sm:$0xff] }
 0x11e   : >> { %v3030_v49 = vpack.c.bf16 %v838_v61, %v836_v5  ;;  %v2907_v61 = vld [vmem:[%s3762_s14 + $0x108] sm:$0xff] }
 0x11f   : >> { %3017 = vmatprep.subr.bf16.mxu1 %v3016_v60 }
 0x120   : >> { %3019 = vmatpush1.bf16.msra.mxu1 %v3018_v50 }
 0x121   : >> { %3021 = vmatprep.subr.bf16.mxu1 %v3020_v63 }
 0x124   : >> { %3023 = vmatpush1.bf16.msra.mxu1 %v3022_v12 }
 0x125   : >> { %3025 = vmatprep.subr.bf16.mxu1 %v3024_v9 }
 0x127   : >> { %2894 = vmatmul.mubr.msk.f32.vlgmr.msra.gmra.mrb[4].mxu1 %vm755_vm1, %v3569_v24 }
 0x128   : >> { %3027 = vmatpush1.bf16.msra.mxu1 %v3026_v58  ;;  %928 = vmatprep.mubr.f32.mxu1 %v4480_v3 }
 0x129   : >> { %3029 = vmatprep.subr.bf16.mxu1 %v3028_v6 }
 0x12c   : >> { %3031 = vmatpush1.bf16.msra.mxu1 %v3030_v49  ;;  %v2909_v49 = vld [vmem:[%s3762_s14 + $0x148] sm:$0xff] }
 0x12f   : >> { %2896 = vmatmul.mubr.msk.f32.vlgmr.msra.gmra.mrb[6].mxu1 %vm755_vm1, %v4447_v16 }
 0x130   : >> { %934 = vmatprep.mubr.f32.mxu1 %v4480_v3 }
 0x133   : >> { %2897 = vmatmul.mubr.msk.f32.gmra.mrb[8].mxu1 %vm755_vm1, %v4446_v17 }
 0x134   : >> { %940 = vmatprep.mubr.f32.mxu1 %v4480_v3 }
 0x137   : >> { %2898 = vmatmul.mubr.msk.f32.gmra.mrb[10].mxu1 %vm755_vm1, %v4445_v18 }
 0x138   : >> { %946 = vmatprep.mubr.f32.mxu1 %v4480_v3 }
 0x13b   : >> { %2899 = vmatmul.mubr.msk.f32.gmra.mrb[12].mxu1 %vm755_vm1, %v4444_v19 }
 0x13c   : >> { %952 = vmatprep.mubr.f32.mxu1 %v4480_v3 }
 0x13f   : >> { %2900 = vmatmul.mubr.msk.f32.gmra.mrb[14].mxu1 %vm755_vm1, %v4443_v20 }
 0x140   : >> { %958 = vmatprep.mubr.f32.mxu1 %v4480_v3 }
 0x143   : >> { %2901 = vmatmul.mubr.msk.f32.gmra.mrb[16].mxu1 %vm755_vm1, %v4442_v21 }
 0x144   : >> { %964 = vmatprep.mubr.f32.mxu1 %v4480_v3 }
 0x147   : >> { %2902 = vmatmul.mubr.msk.f32.gmra.mrb[18].mxu1 %vm755_vm1, %v4441_v22 }
 0x148   : >> { %970 = vmatprep.mubr.f32.mxu1 %v4480_v3 }
 0x14b   : >> { %2903 = vmatmul.mubr.msk.f32.gmra.mrb[20].mxu1 %vm755_vm1, %v4440_v23 }
 0x14c   : >> { %1252 = vmatprep.mubr.f32.mxu1 %v4480_v3 }
 0x1fa   : >> { %v3806_v9 = vpop.f32.mrb[4].mxu1 }
 0x1fb   : >> { %v3808_v10 = vpop.f32.mrb[5].mxu1 }
 0x202   : >> { %v930_v11 = vpop.f32.mrb[6].mxu1 }
 0x203   : >> { %v932_v12 = vpop.f32.mrb[7].mxu1  ;;  %v977_v62 = vmul.f32 %v930_v11, %v3749_v1 }
 0x204   : >> { %v978_v50 = vmul.f32 %v932_v12, %v3747_v0 }
 0x206   : >> { %v936_v13 = vpop.f32.mrb[8].mxu1 }
 0x207   : >> { %v979_v57 = vmul.f32 %v936_v13, %v3751_v2  ;;  %v938_v60 = vpop.f32.mrb[9].mxu1 }
 0x208   : >> { %v980_v51 = vmul.f32 %v938_v60, %v3753_v4  ;;  %v2906_v60 = vld [vmem:[%s3762_s14 + $0x100] sm:$0xff] }
 0x209   : >> { %v3034_v52 = vpack.c.bf16 %v979_v57, %v977_v62  ;;  %v3040_v57 = vpack.c.bf16 %v2909_v49, %v2907_v61  ;;  %v2936_v49 = vld [vmem:[%s3762_s14 + $0x200] sm:$0xff] }
 0x20a   : >> { %v3032_v53 = vpack.c.bf16 %v980_v51, %v978_v50  ;;  %v942_v54 = vpop.f32.mrb[10].mxu1  ;;  %v2908_v50 = vld [vmem:[%s3762_s14 + $0x140] sm:$0xff]  ;;  %v2911_v51 = vld [vmem:[%s3762_s14 + $0x188] sm:$0xff] }
 0x20b   : >> { %v944_v63 = vpop.f32.mrb[11].mxu1  ;;  %v981_v58 = vmul.f32 %v942_v54, %v3755_v7 }
 0x20c   : >> { %3033 = vmatprep.subr.bf16.mxu0 %v3032_v53  ;;  %v982_v11 = vmul.f32 %v944_v63, %v3743_v55  ;;  %v3042_v53 = vpack.c.bf16 %v2908_v50, %v2906_v60  ;;  %v2910_v63 = vld [vmem:[%s3762_s14 + $0x180] sm:$0xff] }
 0x20d   : >> { %3035 = vmatpush1.bf16.msra.mxu0 %v3034_v52  ;;  %v2913_v52 = vld [vmem:[%s3762_s14 + $0x1c8] sm:$0xff]  ;;  %v2940_v60 = vld [vmem:[%s3762_s14 + $0x280] sm:$0xff] }
 0x20e   : >> { %v948_v59 = vpop.f32.mrb[12].mxu1  ;;  %v3044_v54 = vpack.c.bf16 %v2913_v52, %v2911_v51  ;;  %v2942_v50 = vld [vmem:[%s3762_s14 + $0x2c0] sm:$0xff]  ;;  %v2967_v51 = vld [vmem:[%s3762_s14 + $0x308] sm:$0xff] }
 0x20f   : >> { %v983_v6 = vmul.f32 %v948_v59, %v3757_v8  ;;  %v950_v5 = vpop.f32.mrb[13].mxu1  ;;  %v2912_v59 = vld [vmem:[%s3762_s14 + $0x1c0] sm:$0xff]  ;;  %v2969_v52 = vld [vmem:[%s3762_s14 + $0x348] sm:$0xff] }
 0x210   : >> { %v984_v12 = vmul.f32 %v950_v5, %v3745_v56  ;;  %v2937_v5 = vld [vmem:[%s3762_s14 + $0x208] sm:$0xff] }
 0x211   : >> { %v3038_v13 = vpack.c.bf16 %v983_v6, %v981_v58  ;;  %v2939_v58 = vld [vmem:[%s3762_s14 + $0x248] sm:$0xff]  ;;  %v3046_v6 = vpack.c.bf16 %v2912_v59, %v2910_v63  ;;  %v2966_v63 = vld [vmem:[%s3762_s14 + $0x300] sm:$0xff] }
 0x212   : >> { %v3036_v62 = vpack.c.bf16 %v984_v12, %v982_v11  ;;  %v3056_v61 = vpack.c.bf16 %v2939_v58, %v2937_v5  ;;  %v2938_v11 = vld [vmem:[%s3762_s14 + $0x240] sm:$0xff]  ;;  %v2941_v12 = vld [vmem:[%s3762_s14 + $0x288] sm:$0xff] }
 0x213   : >> { %v2968_v59 = vld [vmem:[%s3762_s14 + $0x340] sm:$0xff]  ;;  %v2971_v5 = vld [vmem:[%s3762_s14 + $0x388] sm:$0xff] }
 0x214   : >> { %3037 = vmatprep.subr.bf16.mxu0 %v3036_v62  ;;  %v3058_v62 = vpack.c.bf16 %v2938_v11, %v2936_v49  ;;  %v2973_v58 = vld [vmem:[%s3762_s14 + $0x3c8] sm:$0xff]  ;;  %v2970_v49 = vld [vmem:[%s3762_s14 + $0x380] sm:$0xff] }
 0x215   : >> { %3039 = vmatpush1.bf16.msra.mxu0 %v3038_v13  ;;  %v2943_v13 = vld [vmem:[%s3762_s14 + $0x2c8] sm:$0xff]  ;;  %v2972_v11 = vld [vmem:[%s3762_s14 + $0x3c0] sm:$0xff] }
 0x216   : >> { %3041 = vmatprep.subr.bf16.mxu0 %v3040_v57  ;;  %v3060_v57 = vpack.c.bf16 %v2943_v13, %v2941_v12  ;;  %v3078_v12 = vpack.c.bf16 %v2972_v11, %v2970_v49  ;;  %v3917_v13 = vpop.f32.mrb[14].mxu1 }
 0x218   : >> { %2904 = vmatmul.mubr.msk.f32.vlgmr.msra.gmra.mrb[12].mxu0 %vm755_vm1, %v3569_v24 }
 0x219   : >> { %3043 = vmatpush1.bf16.msra.mxu0 %v3042_v53  ;;  %1131 = vmatprep.mubr.f32.mxu0 %v4480_v3  ;;  %v3062_v53 = vpack.c.bf16 %v2942_v50, %v2940_v60 }
 0x21a   : >> { %3045 = vmatprep.subr.bf16.mxu0 %v3044_v54  ;;  %v3072_v54 = vpack.c.bf16 %v2969_v52, %v2967_v51 }
 0x21d   : >> { %3047 = vmatpush1.bf16.msra.mxu0 %v3046_v6  ;;  %v3074_v6 = vpack.c.bf16 %v2968_v59, %v2966_v63 }
 0x21e   : >> { %3057 = vmatprep.subr.bf16.mxu0 %v3056_v61  ;;  %v3076_v61 = vpack.c.bf16 %v2973_v58, %v2971_v5 }
 0x220   : >> { %2914 = vmatmul.mubr.msk.f32.vlgmr.msra.gmra.mrb[14].mxu0 %vm755_vm1, %v4447_v16 }
 0x221   : >> { %1137 = vmatprep.mubr.f32.mxu0 %v4480_v3  ;;  %3059 = vmatpush1.bf16.msra.mxu0 %v3058_v62  ;;  %v3919_v62 = vpop.f32.mrb[15].mxu1 }
 0x222   : >> { %3061 = vmatprep.subr.bf16.mxu0 %v3060_v57  ;;  %v3921_v57 = vpop.f32.mrb[16].mxu1 }
 0x223   : >> { %v3923_v60 = vpop.f32.mrb[17].mxu1 }
 0x224   : >> { %2915 = vmatmul.mubr.msk.f32.gmra.mrb[16].mxu0 %vm755_vm1, %v4446_v17  ;;  %v3925_v50 = vpop.f32.mrb[18].mxu1 }
 0x225   : >> { %1143 = vmatprep.mubr.f32.mxu0 %v4480_v3  ;;  %3063 = vmatpush1.bf16.msra.mxu0 %v3062_v53  ;;  %v3927_v51 = vpop.f32.mrb[19].mxu1 }
 0x226   : >> { %3073 = vmatprep.subr.bf16.mxu0 %v3072_v54  ;;  %v3929_v52 = vpop.f32.mrb[20].mxu1 }
 0x227   : >> { %v3931_v53 = vpop.f32.mrb[21].mxu1 }
 0x228   : >> { %2916 = vmatmul.mubr.msk.f32.gmra.mrb[18].mxu0 %vm755_vm1, %v4445_v18 }
 0x229   : >> { %1149 = vmatprep.mubr.f32.mxu0 %v4480_v3 }
 0x22c   : >> { %2917 = vmatmul.mubr.msk.f32.gmra.mrb[20].mxu0 %vm755_vm1, %v4444_v19 }
 0x22d   : >> { %1155 = vmatprep.mubr.f32.mxu0 %v4480_v3 }
 0x230   : >> { %2918 = vmatmul.mubr.msk.f32.gmra.mrb[22].mxu0 %vm755_vm1, %v4443_v20 }
 0x231   : >> { %1161 = vmatprep.mubr.f32.mxu0 %v4480_v3 }
 0x234   : >> { %2919 = vmatmul.mubr.msk.f32.gmra.mrb[24].mxu0 %vm755_vm1, %v4442_v21 }
 0x235   : >> { %1167 = vmatprep.mubr.f32.mxu0 %v4480_v3 }
 0x238   : >> { %2920 = vmatmul.mubr.msk.f32.gmra.mrb[26].mxu0 %vm755_vm1, %v4441_v22 }
 0x239   : >> { %1173 = vmatprep.mubr.f32.mxu0 %v4480_v3 }
 0x23c   : >> { %2921 = vmatmul.mubr.msk.f32.gmra.mrb[28].mxu0 %vm755_vm1, %v4440_v23 }
 0x23d   : >> { %1578 = vmatprep.mubr.f32.mxu0 %v4480_v3 }
 0x240   : >> { %2944 = vmatmul.mubr.msk.f32.vlgmr.msra.gmra.mrb[30].mxu0 %vm755_vm1, %v4447_v16 }
 0x241   : >> { %1584 = vmatprep.mubr.f32.mxu0 %v4480_v3  ;;  %3075 = vmatpush1.bf16.msra.mxu0 %v3074_v6 }
 0x242   : >> { %3077 = vmatprep.subr.bf16.mxu0 %v3076_v61 }
 0x244   : >> { %2945 = vmatmul.mubr.msk.f32.gmra.mrb[32].mxu0 %vm755_vm1, %v4446_v17 }
 0x245   : >> { %1590 = vmatprep.mubr.f32.mxu0 %v4480_v3  ;;  %3079 = vmatpush1.bf16.msra.mxu0 %v3078_v12 }
 0x248   : >> { %2946 = vmatmul.mubr.msk.f32.gmra.mrb[34].mxu0 %vm755_vm1, %v4445_v18 }
 0x249   : >> { %1596 = vmatprep.mubr.f32.mxu0 %v4480_v3 }
 0x24c   : >> { %2947 = vmatmul.mubr.msk.f32.gmra.mrb[36].mxu0 %vm755_vm1, %v4444_v19 }
 0x24d   : >> { %1602 = vmatprep.mubr.f32.mxu0 %v4480_v3 }
 0x250   : >> { %2948 = vmatmul.mubr.msk.f32.gmra.mrb[38].mxu0 %vm755_vm1, %v4443_v20 }
 0x251   : >> { %1608 = vmatprep.mubr.f32.mxu0 %v4480_v3 }
 0x254   : >> { %2949 = vmatmul.mubr.msk.f32.gmra.mrb[40].mxu0 %vm755_vm1, %v4442_v21 }
 0x255   : >> { %1614 = vmatprep.mubr.f32.mxu0 %v4480_v3 }
 0x258   : >> { %2950 = vmatmul.mubr.msk.f32.gmra.mrb[42].mxu0 %vm755_vm1, %v4441_v22 }
 0x259   : >> { %1620 = vmatprep.mubr.f32.mxu0 %v4480_v3 }
 0x25c   : >> { %2951 = vmatmul.mubr.msk.f32.gmra.mrb[44].mxu0 %vm755_vm1, %v4440_v23 }
 0x25d   : >> { %2013 = vmatprep.mubr.f32.mxu0 %v4480_v3 }
 0x260   : >> { %2974 = vmatmul.mubr.msk.f32.vlgmr.msra.gmra.mrb[46].mxu0 %vm755_vm1, %v4447_v16 }
 0x261   : >> { %2019 = vmatprep.mubr.f32.mxu0 %v4480_v3 }
 0x264   : >> { %2975 = vmatmul.mubr.msk.f32.gmra.mrb[48].mxu0 %vm755_vm1, %v4446_v17 }
 0x265   : >> { %2025 = vmatprep.mubr.f32.mxu0 %v4480_v3 }
 0x268   : >> { %2976 = vmatmul.mubr.msk.f32.gmra.mrb[50].mxu0 %vm755_vm1, %v4445_v18 }
 0x269   : >> { %2031 = vmatprep.mubr.f32.mxu0 %v4480_v3 }
 0x26c   : >> { %2977 = vmatmul.mubr.msk.f32.gmra.mrb[52].mxu0 %vm755_vm1, %v4444_v19 }
 0x26d   : >> { %2037 = vmatprep.mubr.f32.mxu0 %v4480_v3 }
 0x270   : >> { %2978 = vmatmul.mubr.msk.f32.gmra.mrb[54].mxu0 %vm755_vm1, %v4443_v20 }
 0x271   : >> { %2043 = vmatprep.mubr.f32.mxu0 %v4480_v3 }
 0x274   : >> { %2979 = vmatmul.mubr.msk.f32.gmra.mrb[56].mxu0 %vm755_vm1, %v4442_v21 }
 0x275   : >> { %2049 = vmatprep.mubr.f32.mxu0 %v4480_v3 }
 0x278   : >> { %2980 = vmatmul.mubr.msk.f32.gmra.mrb[58].mxu0 %vm755_vm1, %v4441_v22 }
 0x279   : >> { %2055 = vmatprep.mubr.f32.mxu0 %v4480_v3 }
 0x27c   : >> { %2981 = vmatmul.mubr.msk.f32.gmra.mrb[60].mxu0 %vm755_vm1, %v4440_v23 }
 0x27d   : >> { %2332 = vmatprep.mubr.f32.mxu0 %v4480_v3 }
 0x2eb   : >> { %v1051_v54 = vpop.f32.mrb[12].mxu0 }
 0x2ec   : >> { %v3934_v63 = vadd.f32 %v1051_v54, %v3806_v9  ;;  %v1053_v59 = vpop.f32.mrb[13].mxu0 }
 0x2ed   : >> { %v3937_v5 = vadd.f32 %v1053_v59, %v3808_v10 }
 0x2f3   : >> { %v1133_v58 = vpop.f32.mrb[14].mxu0 }
 0x2f4   : >> { %v1135_v6 = vpop.f32.mrb[15].mxu0  ;;  %v1180_v49 = vmul.f32 %v1133_v58, %v3749_v1 }
 0x2f5   : >> { %v1181_v14 = vmul.f32 %v1135_v6, %v3747_v0 }
 0x2f7   : >> { %v1139_v61 = vpop.f32.mrb[16].mxu0 }
 0x2f8   : >> { %v1182_v11 = vmul.f32 %v1139_v61, %v3751_v2  ;;  %v1141_v12 = vpop.f32.mrb[17].mxu0 }
 0x2f9   : >> { %v1183_v15 = vmul.f32 %v1141_v12, %v3753_v4 }
 0x2fa   : >> { %v3050_v16 = vpack.c.bf16 %v1182_v11, %v1180_v49 }
 0x2fb   : >> { %v3048_v17 = vpack.c.bf16 %v1183_v15, %v1181_v14  ;;  %v1145_v54 = vpop.f32.mrb[18].mxu0 }
 0x2fc   : >> { %v1147_v18 = vpop.f32.mrb[19].mxu0  ;;  %v1184_v19 = vmul.f32 %v1145_v54, %v3755_v7 }
 0x2fd   : >> { %3049 = vmatprep.subr.bf16.mxu1 %v3048_v17  ;;  %v1185_v58 = vmul.f32 %v1147_v18, %v3743_v55 }
 0x2fe   : >> { %3051 = vmatpush1.bf16.msra.mxu1 %v3050_v16 }
 0x2ff   : >> { %v1151_v59 = vpop.f32.mrb[20].mxu0 }
 0x300   : >> { %v1186_v20 = vmul.f32 %v1151_v59, %v3757_v8  ;;  %v1153_v21 = vpop.f32.mrb[21].mxu0 }
 0x301   : >> { %v1187_v61 = vmul.f32 %v1153_v21, %v3745_v56 }
 0x302   : >> { %v3054_v22 = vpack.c.bf16 %v1186_v20, %v1184_v19 }
 0x303   : >> { %v3052_v6 = vpack.c.bf16 %v1187_v61, %v1185_v58  ;;  %v3947_v23 = vpop.f32.mrb[22].mxu0 }
 0x304   : >> { %v3949_v49 = vpop.f32.mrb[23].mxu0 }
 0x305   : >> { %3053 = vmatprep.subr.bf16.mxu1 %v3052_v6 }
 0x306   : >> { %3055 = vmatpush1.bf16.msra.mxu1 %v3054_v22 }
 0x307   : >> { %v3951_v14 = vpop.f32.mrb[24].mxu0 }
 0x308   : >> { %v3953_v15 = vpop.f32.mrb[25].mxu0 }
 0x309   : >> { %2922 = vmatmul.mubr.msk.f32.vlgmr.msra.gmra.mrb[22].mxu1 %vm755_vm1, %v3569_v24 }
 0x30a   : >> { %1359 = vmatprep.mubr.f32.mxu1 %v4480_v3 }
 0x30b   : >> { %v3958_v16 = vpop.f32.mrb[26].mxu0 }
 0x30c   : >> { %v3960_v17 = vpop.f32.mrb[27].mxu0 }
 0x30f   : >> { %v3962_v18 = vpop.f32.mrb[28].mxu0 }
 0x310   : >> { %v3964_v19 = vpop.f32.mrb[29].mxu0 }
 0x313   : >> { %v1580_v20 = vpop.f32.mrb[30].mxu0 }
 0x314   : >> { %v1582_v21 = vpop.f32.mrb[31].mxu0  ;;  %v3967_v11 = vmul.f32 %v1580_v20, %v3749_v1 }
 0x315   : >> { %v3973_v59 = vmul.f32 %v1582_v21, %v3747_v0 }
 0x317   : >> { %v1586_v22 = vpop.f32.mrb[32].mxu0 }
 0x318   : >> { %v3970_v12 = vmul.f32 %v1586_v22, %v3751_v2  ;;  %v1588_v54 = vpop.f32.mrb[33].mxu0 }
 0x319   : >> { %v3976_v58 = vmul.f32 %v1588_v54, %v3753_v4 }
 0x31b   : >> { %v1592_v25 = vpop.f32.mrb[34].mxu0 }
 0x31c   : >> { %v1594_v26 = vpop.f32.mrb[35].mxu0  ;;  %v3983_v27 = vmul.f32 %v1592_v25, %v3755_v7 }
 0x31d   : >> { %v3989_v28 = vmul.f32 %v1594_v26, %v3743_v55 }
 0x31f   : >> { %v1598_v20 = vpop.f32.mrb[36].mxu0 }
 0x320   : >> { %v3986_v22 = vmul.f32 %v1598_v20, %v3757_v8  ;;  %v1600_v21 = vpop.f32.mrb[37].mxu0 }
 0x321   : >> { %v3992_v54 = vmul.f32 %v1600_v21, %v3745_v56 }
 0x323   : >> { %v3998_v37 = vpop.f32.mrb[38].mxu0 }
 0x324   : >> { %v4000_v25 = vpop.f32.mrb[39].mxu0 }
 0x327   : >> { %v4002_v38 = vpop.f32.mrb[40].mxu0 }
 0x328   : >> { %v4004_v20 = vpop.f32.mrb[41].mxu0 }
 0x32b   : >> { %v4006_v39 = vpop.f32.mrb[42].mxu0 }
 0x32c   : >> { %v4008_v26 = vpop.f32.mrb[43].mxu0 }
 0x32f   : >> { %v4010_v21 = vpop.f32.mrb[44].mxu0 }
 0x330   : >> { %v4012_v40 = vpop.f32.mrb[45].mxu0 }
 0x331   : >> { %4481 = vst [vmem:[#allocation46_spill] sm:$0xff] %v4012_v40 }
 0x333   : >> { %v2015_v61 = vpop.f32.mrb[46].mxu0 }
 0x334   : >> { %v2017_v41 = vpop.f32.mrb[47].mxu0  ;;  %v4015_v6 = vmul.f32 %v2015_v61, %v3749_v1 }
 0x335   : >> { %v4021_v47 = vmul.f32 %v2017_v41, %v3747_v0 }
 0x337   : >> { %v2021_v45 = vpop.f32.mrb[48].mxu0 }
 0x338   : >> { %v4018_v46 = vmul.f32 %v2021_v45, %v3751_v2  ;;  %v2023_v42 = vpop.f32.mrb[49].mxu0 }
 0x339   : >> { %v4024_v43 = vmul.f32 %v2023_v42, %v3753_v4 }
 0x33b   : >> { %v2027_v36 = vpop.f32.mrb[50].mxu0 }
 0x33c   : >> { %v2029_v35 = vpop.f32.mrb[51].mxu0  ;;  %v4031_v61 = vmul.f32 %v2027_v36, %v3755_v7 }
 0x33d   : >> { %v4037_v41 = vmul.f32 %v2029_v35, %v3743_v55 }
 0x33f   : >> { %v2033_v1 = vpop.f32.mrb[52].mxu0 }
 0x340   : >> { %v4034_v2 = vmul.f32 %v2033_v1, %v3757_v8  ;;  %v2035_v0 = vpop.f32.mrb[53].mxu0 }
 0x341   : >> { %v4040_v4 = vmul.f32 %v2035_v0, %v3745_v56 }
 0x3dc   : >> { %v1254_v44 = vpop.f32.mrb[22].mxu1 }
 0x3dd   : >> { %v1255_v7 = vadd.f32 %v1254_v44, %v3806_v9  ;;  %v1256_v36 = vpop.f32.mrb[23].mxu1 }
 0x3de   : >> { %v1257_v8 = vadd.f32 %v1256_v36, %v3808_v10 }
 0x3df   : >> { %v4049_v1 = vmax.f32 %v3934_v63, %v1255_v7 }
 0x3e0   : >> { %v4052_v35 = vmax.f32 %v3937_v5, %v1257_v8 }
 0x3e1   : >> { %v1261_v55 = vsub.f32 %v3934_v63, %v4049_v1  ;;  %v1267_v56 = vsub.f32 %v1255_v7, %v4049_v1 }
 0x3e2   : >> { %v1262_v0 = vsub.f32 %v3937_v5, %v4052_v35  ;;  %v1268_v42 = vsub.f32 %v1257_v8, %v4052_v35 }
 0x3e3   : >> { %v1263_v44 = vmul.f32 1.442695, %v1261_v55  ;;  %v1269_v45 = vmul.f32 1.442695, %v1267_v56 }
 0x3e4   : >> { %v1265_v48 = vmul.f32 1.442695, %v1262_v0  ;;  %v1271_v36 = vmul.f32 1.442695, %v1268_v42 }
 0x3e5   : >> { %3222 = vpow2.f32 %v1263_v44 }
 0x3e6   : >> { %3224 = vpow2.f32 %v1269_v45 }
 0x3e7   : >> { %3226 = vpow2.f32 %v1265_v48  ;;  %v4482_v48 = vpack.c.bf16 %v3976_v58, %v3973_v59 }
 0x3e8   : >> { %3228 = vpow2.f32 %v1271_v36 }
 0x3ef   : >> { %v3223_v34 = vpop.eup %3222 }
 0x3f0   : >> { %v3225_v33 = vpop.eup %3224 }
 0x3f1   : >> { %v3227_v40 = vpop.eup %3226  ;;  %v4060_v63 = vadd.f32 %v3225_v33, %v3223_v34 }
 0x3f2   : >> { %v3229_v7 = vpop.eup %3228  ;;  %2923 = vmatprep.subr.msk.mxu1 %vm1288_vm2, %v3227_v40 }
 0x3f3   : >> { %v4063_v5 = vadd.f32 %v3229_v7, %v3227_v40  ;;  %2924 = vmatpush1.msk.msra.mxu1 %vm1288_vm2, %v3223_v34  ;;  %v4484_v34 = vpack.c.bf16 %v3992_v54, %v3989_v28  ;;  %v4485_v40 = vpack.c.bf16 %v3986_v22, %v3983_v27 }
 0x3f4   : >> { %2925 = vmatmul.mubr.msk.f32.vlgmr.msra.gmra.mrb[24].mxu1 %vm1275_vm3, %v3594_v29  ;;  %2929 = vmatprep.subr.msk.mxu1 %vm1288_vm2, %v3229_v7 }
 0x3f5   : >> { %2930 = vmatpush1.msk.msra.mxu1 %vm1288_vm2, %v3225_v33  ;;  %1365 = vmatprep.mubr.f32.mxu1 %v4480_v3  ;;  %v4483_v33 = vpack.c.bf16 %v3970_v12, %v3967_v11 }
 0x3f6   : >> { %3065 = vmatprep.subr.bf16.mxu1 %v4482_v48 }
 0x3f8   : >> { %2926 = vmatmul.mubr.msk.f32.gmra.mrb[26].mxu1 %vm1275_vm3, %v3599_v30 }
 0x3f9   : >> { %1371 = vmatprep.mubr.f32.mxu1 %v4480_v3 }
 0x3fc   : >> { %2927 = vmatmul.mubr.msk.f32.gmra.mrb[28].mxu1 %vm1275_vm3, %v3604_v31 }
 0x3fd   : >> { %1377 = vmatprep.mubr.f32.mxu1 %v4480_v3 }
 0x400   : >> { %2928 = vmatmul.mubr.msk.f32.gmra.mrb[30].mxu1 %vm1275_vm3, %v3609_v32 }
 0x401   : >> { %1462 = vmatprep.mubr.f32.mxu1 %v4480_v3 }
 0x404   : >> { %2931 = vmatmul.mubr.msk.f32.vlgmr.msra.gmra.mrb[32].mxu1 %vm1275_vm3, %v3594_v29 }
 0x405   : >> { %3067 = vmatpush1.bf16.msra.mxu1 %v4483_v33  ;;  %1468 = vmatprep.mubr.f32.mxu1 %v4480_v3 }
 0x406   : >> { %3069 = vmatprep.subr.bf16.mxu1 %v4484_v34 }
 0x408   : >> { %2932 = vmatmul.mubr.msk.f32.gmra.mrb[34].mxu1 %vm1275_vm3, %v3599_v30 }
 0x409   : >> { %3071 = vmatpush1.bf16.msra.mxu1 %v4485_v40  ;;  %1474 = vmatprep.mubr.f32.mxu1 %v4480_v3 }
 0x40c   : >> { %2933 = vmatmul.mubr.msk.f32.gmra.mrb[36].mxu1 %vm1275_vm3, %v3604_v31 }
 0x40d   : >> { %1480 = vmatprep.mubr.f32.mxu1 %v4480_v3 }
 0x410   : >> { %2934 = vmatmul.mubr.msk.f32.gmra.mrb[38].mxu1 %vm1275_vm3, %v3609_v32 }
 0x411   : >> { %1699 = vmatprep.mubr.f32.mxu1 %v4480_v3 }
 0x414   : >> { %2952 = vmatmul.mubr.msk.f32.vlgmr.msra.gmra.mrb[40].mxu1 %vm755_vm1, %v3569_v24 }
 0x415   : >> { %1794 = vmatprep.mubr.f32.mxu1 %v4480_v3 }
 0x4c7   : >> { %v1361_v28 = vpop.f32.mrb[24].mxu1 }
 0x4c8   : >> { %v1384_v27 = vmul.f32 %v1361_v28, %v3917_v13  ;;  %v1363_v11 = vpop.f32.mrb[25].mxu1 }
 0x4c9   : >> { %v1385_v12 = vmul.f32 %v1363_v11, %v3919_v62 }
 0x4cb   : >> { %v1367_v59 = vpop.f32.mrb[26].mxu1 }
 0x4cc   : >> { %v1386_v58 = vmul.f32 %v1367_v59, %v3921_v57  ;;  %v1369_v22 = vpop.f32.mrb[27].mxu1 }
 0x4cd   : >> { %v1387_v54 = vmul.f32 %v1369_v22, %v3923_v60 }
 0x4cf   : >> { %v1373_v42 = vpop.f32.mrb[28].mxu1 }
 0x4d0   : >> { %v1388_v45 = vmul.f32 %v1373_v42, %v3925_v50  ;;  %v1375_v8 = vpop.f32.mrb[29].mxu1 }
 0x4d1   : >> { %v1389_v55 = vmul.f32 %v1375_v8, %v3927_v51 }
 0x4d3   : >> { %v1379_v56 = vpop.f32.mrb[30].mxu1 }
 0x4d4   : >> { %v1390_v0 = vmul.f32 %v1379_v56, %v3929_v52  ;;  %v1381_v44 = vpop.f32.mrb[31].mxu1 }
 0x4d5   : >> { %v1391_v13 = vmul.f32 %v1381_v44, %v3931_v53 }
 0x4d7   : >> { %v1464_v36 = vpop.f32.mrb[32].mxu1 }
 0x4d8   : >> { %v1487_v62 = vmul.f32 %v1464_v36, %v3947_v23  ;;  %v1466_v7 = vpop.f32.mrb[33].mxu1 }
 0x4d9   : >> { %v1488_v57 = vmul.f32 %v1466_v7, %v3949_v49 }
 0x4da   : >> { %v4117_v48 = vadd.f32 %v1487_v62, %v1384_v27 }
 0x4db   : >> { %v1470_v60 = vpop.f32.mrb[34].mxu1  ;;  %v4119_v33 = vadd.f32 %v1488_v57, %v1385_v12 }
 0x4dc   : >> { %v1489_v50 = vmul.f32 %v1470_v60, %v3951_v14  ;;  %v1472_v51 = vpop.f32.mrb[35].mxu1 }
 0x4dd   : >> { %v1490_v34 = vmul.f32 %v1472_v51, %v3953_v15 }
 0x4de   : >> { %v4123_v52 = vadd.f32 %v1489_v50, %v1386_v58 }
 0x4df   : >> { %v1476_v40 = vpop.f32.mrb[36].mxu1  ;;  %v4125_v53 = vadd.f32 %v1490_v34, %v1387_v54 }
 0x4e0   : >> { %v1491_v23 = vmul.f32 %v1476_v40, %v3958_v16  ;;  %v1478_v28 = vpop.f32.mrb[37].mxu1 }
 0x4e1   : >> { %v1492_v49 = vmul.f32 %v1478_v28, %v3960_v17 }
 0x4e2   : >> { %v4129_v27 = vadd.f32 %v1491_v23, %v1388_v45 }
 0x4e3   : >> { %v1482_v11 = vpop.f32.mrb[38].mxu1  ;;  %v4131_v12 = vadd.f32 %v1492_v49, %v1389_v55 }
 0x4e4   : >> { %v1493_v14 = vmul.f32 %v1482_v11, %v3962_v18  ;;  %v1484_v59 = vpop.f32.mrb[39].mxu1 }
 0x4e5   : >> { %v1494_v15 = vmul.f32 %v1484_v59, %v3964_v19 }
 0x4e6   : >> { %v4135_v58 = vadd.f32 %v1493_v14, %v1390_v0 }
 0x4e7   : >> { %v1701_v22 = vpop.f32.mrb[40].mxu1  ;;  %v4137_v54 = vadd.f32 %v1494_v15, %v1391_v13 }
 0x4e8   : >> { %v1702_v16 = vadd.f32 %v1701_v22, %v3806_v9  ;;  %v1703_v42 = vpop.f32.mrb[41].mxu1 }
 0x4e9   : >> { %v1704_v17 = vadd.f32 %v1703_v42, %v3808_v10 }
 0x4ea   : >> { %v4142_v45 = vmax.f32 %v4049_v1, %v1702_v16 }
 0x4eb   : >> { %v4145_v8 = vmax.f32 %v4052_v35, %v1704_v17 }
 0x4ec   : >> { %v1708_v18 = vsub.f32 %v4049_v1, %v4142_v45  ;;  %v1714_v19 = vsub.f32 %v1702_v16, %v4142_v45 }
 0x4ed   : >> { %v1709_v55 = vsub.f32 %v4052_v35, %v4145_v8  ;;  %v1715_v56 = vsub.f32 %v1704_v17, %v4145_v8 }
 0x4ee   : >> { %v1710_v0 = vmul.f32 1.442695, %v1708_v18  ;;  %v1716_v44 = vmul.f32 1.442695, %v1714_v19 }
 0x4ef   : >> { %v1712_v13 = vmul.f32 1.442695, %v1709_v55  ;;  %v1718_v36 = vmul.f32 1.442695, %v1715_v56 }
 0x4f0   : >> { %3230 = vpow2.f32 %v1710_v0 }
 0x4f1   : >> { %3232 = vpow2.f32 %v1716_v44 }
 0x4f2   : >> { %3234 = vpow2.f32 %v1712_v13 }
 0x4f3   : >> { %3236 = vpow2.f32 %v1718_v36 }
 0x4fa   : >> { %v3231_v62 = vpop.eup %3230 }
 0x4fb   : >> { %v3233_v7 = vpop.eup %3232  ;;  %v1720_v57 = vmul.f32 %v3231_v62, %v4060_v63  ;;  %v4486_v63 = vpack.c.bf16 %v4024_v43, %v4021_v47  ;;  %v4487_v43 = vpack.c.bf16 %v4018_v46, %v4015_v6  ;;  %v4488_v47 = vpack.c.bf16 %v4040_v4, %v4037_v41  ;;  %v4202_v46 = vpop.f32.mrb[54].mxu0 }
 0x4fc   : >> { %v3235_v1 = vpop.eup %3234  ;;  %v4204_v6 = vpop.f32.mrb[55].mxu0 }
 0x4fd   : >> { %v4154_v60 = vadd.f32 %v3233_v7, %v1720_v57  ;;  %v1721_v50 = vmul.f32 %v3235_v1, %v4063_v5  ;;  %2953 = vmatprep.subr.msk.mxu1 %vm1288_vm2, %v3235_v1  ;;  %v3237_v35 = vpop.eup %3236  ;;  %v4489_v5 = vpack.c.bf16 %v4034_v2, %v4031_v61  ;;  %v4206_v61 = vpop.f32.mrb[56].mxu0 }
 0x4fe   : >> { %2954 = vmatpush1.msk.msra.mxu1 %vm1288_vm2, %v3231_v62  ;;  %v4208_v2 = vpop.f32.mrb[57].mxu0 }
 0x4ff   : >> { %v4159_v51 = vadd.f32 %v3237_v35, %v1721_v50  ;;  %2955 = vmatmul.mubr.msk.f32.vlgmr.msra.gmra.mrb[42].mxu1 %vm1275_vm3, %v3594_v29  ;;  %2959 = vmatprep.subr.msk.mxu1 %vm1288_vm2, %v3237_v35  ;;  %v4210_v41 = vpop.f32.mrb[58].mxu0 }
 0x500   : >> { %2960 = vmatpush1.msk.msra.mxu1 %vm1288_vm2, %v3233_v7  ;;  %1800 = vmatprep.mubr.f32.mxu1 %v4480_v3  ;;  %v4212_v4 = vpop.f32.mrb[59].mxu0 }
 0x501   : >> { %3081 = vmatprep.subr.bf16.mxu1 %v4486_v63  ;;  %v4214_v34 = vpop.f32.mrb[60].mxu0 }
 0x502   : >> { %v4216_v40 = vpop.f32.mrb[61].mxu0 }
 0x503   : >> { %2956 = vmatmul.mubr.msk.f32.gmra.mrb[44].mxu1 %vm1275_vm3, %v3599_v30 }
 0x504   : >> { %1806 = vmatprep.mubr.f32.mxu1 %v4480_v3 }
 0x507   : >> { %2957 = vmatmul.mubr.msk.f32.gmra.mrb[46].mxu1 %vm1275_vm3, %v3604_v31 }
 0x508   : >> { %1812 = vmatprep.mubr.f32.mxu1 %v4480_v3 }
 0x50b   : >> { %2958 = vmatmul.mubr.msk.f32.gmra.mrb[48].mxu1 %vm1275_vm3, %v3609_v32 }
 0x50c   : >> { %1897 = vmatprep.mubr.f32.mxu1 %v4480_v3 }
 0x50f   : >> { %2961 = vmatmul.mubr.msk.f32.vlgmr.msra.gmra.mrb[50].mxu1 %vm1275_vm3, %v3594_v29 }
 0x510   : >> { %3083 = vmatpush1.bf16.msra.mxu1 %v4487_v43  ;;  %1903 = vmatprep.mubr.f32.mxu1 %v4480_v3  ;;  %v4490_v43 = vld [vmem:[#allocation46_spill] sm:$0xff] }
 0x511   : >> { %3085 = vmatprep.subr.bf16.mxu1 %v4488_v47 }
 0x513   : >> { %2962 = vmatmul.mubr.msk.f32.gmra.mrb[52].mxu1 %vm1275_vm3, %v3599_v30 }
 0x514   : >> { %3087 = vmatpush1.bf16.msra.mxu1 %v4489_v5  ;;  %1909 = vmatprep.mubr.f32.mxu1 %v4480_v3 }
 0x517   : >> { %2963 = vmatmul.mubr.msk.f32.gmra.mrb[54].mxu1 %vm1275_vm3, %v3604_v31 }
 0x518   : >> { %1915 = vmatprep.mubr.f32.mxu1 %v4480_v3 }
 0x51b   : >> { %2964 = vmatmul.mubr.msk.f32.gmra.mrb[56].mxu1 %vm1275_vm3, %v3609_v32 }
 0x51c   : >> { %2134 = vmatprep.mubr.f32.mxu1 %v4480_v3 }
 0x51f   : >> { %2982 = vmatmul.mubr.msk.f32.vlgmr.msra.gmra.mrb[58].mxu1 %vm755_vm1, %v3569_v24 }
 0x520   : >> { %2229 = vmatprep.mubr.f32.mxu1 %v4480_v3 }
 0x5d2   : >> { %v1796_v23 = vpop.f32.mrb[42].mxu1 }
 0x5d3   : >> { %v1819_v28 = vmul.f32 %v1796_v23, %v4117_v48  ;;  %v1798_v49 = vpop.f32.mrb[43].mxu1 }
 0x5d4   : >> { %v1820_v11 = vmul.f32 %v1798_v49, %v4119_v33 }
 0x5d6   : >> { %v1802_v14 = vpop.f32.mrb[44].mxu1 }
 0x5d7   : >> { %v1821_v59 = vmul.f32 %v1802_v14, %v4123_v52  ;;  %v1804_v15 = vpop.f32.mrb[45].mxu1 }
 0x5d8   : >> { %v1822_v22 = vmul.f32 %v1804_v15, %v4125_v53 }
 0x5da   : >> { %v1808_v16 = vpop.f32.mrb[46].mxu1 }
 0x5db   : >> { %v1823_v42 = vmul.f32 %v1808_v16, %v4129_v27  ;;  %v1810_v17 = vpop.f32.mrb[47].mxu1 }
 0x5dc   : >> { %v1824_v18 = vmul.f32 %v1810_v17, %v4131_v12 }
 0x5de   : >> { %v1814_v19 = vpop.f32.mrb[48].mxu1 }
 0x5df   : >> { %v1825_v55 = vmul.f32 %v1814_v19, %v4135_v58  ;;  %v1816_v56 = vpop.f32.mrb[49].mxu1 }
 0x5e0   : >> { %v1826_v48 = vmul.f32 %v1816_v56, %v4137_v54 }
 0x5e2   : >> { %v1899_v0 = vpop.f32.mrb[50].mxu1 }
 0x5e3   : >> { %v1922_v33 = vmul.f32 %v1899_v0, %v3998_v37  ;;  %v1901_v44 = vpop.f32.mrb[51].mxu1 }
 0x5e4   : >> { %v1923_v52 = vmul.f32 %v1901_v44, %v4000_v25 }
 0x5e5   : >> { %v4228_v13 = vadd.f32 %v1922_v33, %v1819_v28 }
 0x5e6   : >> { %v1905_v53 = vpop.f32.mrb[52].mxu1  ;;  %v4230_v36 = vadd.f32 %v1923_v52, %v1820_v11 }
 0x5e7   : >> { %v1924_v27 = vmul.f32 %v1905_v53, %v4002_v38  ;;  %v1907_v12 = vpop.f32.mrb[53].mxu1 }
 0x5e8   : >> { %v1925_v62 = vmul.f32 %v1907_v12, %v4004_v20 }
 0x5e9   : >> { %v4234_v58 = vadd.f32 %v1924_v27, %v1821_v59 }
 0x5ea   : >> { %v1911_v7 = vpop.f32.mrb[54].mxu1  ;;  %v4236_v54 = vadd.f32 %v1925_v62, %v1822_v22 }
 0x5eb   : >> { %v1926_v37 = vmul.f32 %v1911_v7, %v4006_v39  ;;  %v1913_v57 = vpop.f32.mrb[55].mxu1 }
 0x5ec   : >> { %v1927_v25 = vmul.f32 %v1913_v57, %v4008_v26 }
 0x5ed   : >> { %v4240_v1 = vadd.f32 %v1926_v37, %v1823_v42 }
 0x5ee   : >> { %v1917_v50 = vpop.f32.mrb[56].mxu1  ;;  %v4242_v35 = vadd.f32 %v1927_v25, %v1824_v18 }
 0x5ef   : >> { %v1928_v38 = vmul.f32 %v1917_v50, %v4010_v21  ;;  %v1919_v63 = vpop.f32.mrb[57].mxu1 }
 0x5f0   : >> { %v1929_v20 = vmul.f32 %v1919_v63, %v4490_v43 }
 0x5f1   : >> { %v4246_v47 = vadd.f32 %v1928_v38, %v1825_v55 }
 0x5f2   : >> { %v2136_v5 = vpop.f32.mrb[58].mxu1  ;;  %v4248_v23 = vadd.f32 %v1929_v20, %v1826_v48 }
 0x5f3   : >> { %v2137_v39 = vadd.f32 %v2136_v5, %v3806_v9  ;;  %v2138_v28 = vpop.f32.mrb[59].mxu1 }
 0x5f4   : >> { %v2139_v26 = vadd.f32 %v2138_v28, %v3808_v10 }
 0x5f5   : >> { %v2141_v49 = vmax.f32 %v4142_v45, %v2137_v39 }
 0x5f6   : >> { %v2142_v11 = vmax.f32 %v4145_v8, %v2139_v26 }
 0x5f7   : >> { %v2143_v14 = vsub.f32 %v4142_v45, %v2141_v49  ;;  %v2149_v21 = vsub.f32 %v2137_v39, %v2141_v49 }
 0x5f8   : >> { %v2144_v59 = vsub.f32 %v4145_v8, %v2142_v11  ;;  %v2150_v15 = vsub.f32 %v2139_v26, %v2142_v11 }
 0x5f9   : >> { %v2145_v22 = vmul.f32 1.442695, %v2143_v14  ;;  %v2151_v16 = vmul.f32 1.442695, %v2149_v21 }
 0x5fa   : >> { %v2147_v42 = vmul.f32 1.442695, %v2144_v59  ;;  %v2153_v17 = vmul.f32 1.442695, %v2150_v15 }
 0x5fb   : >> { %3238 = vpow2.f32 %v2145_v22 }
 0x5fc   : >> { %3240 = vpow2.f32 %v2151_v16 }
 0x5fd   : >> { %3242 = vpow2.f32 %v2147_v42 }
 0x5fe   : >> { %3244 = vpow2.f32 %v2153_v17 }
 0x605   : >> { %v3239_v9 = vpop.eup %3238 }
 0x606   : >> { %v3241_v10 = vpop.eup %3240  ;;  %v2155_v18 = vmul.f32 %v3239_v9, %v4154_v60 }
 0x607   : >> { %v3243_v19 = vpop.eup %3242 }
 0x608   : >> { %v3245_v55 = vpop.eup %3244  ;;  %v2157_v56 = vadd.f32 %v3241_v10, %v2155_v18  ;;  %v2156_v45 = vmul.f32 %v3243_v19, %v4159_v51  ;;  %2983 = vmatprep.subr.msk.mxu1 %vm1288_vm2, %v3243_v19 }
 0x609   : >> { %2989 = vmatprep.subr.msk.mxu0 %vm1288_vm2, %v3245_v55  ;;  %2984 = vmatpush1.msk.msra.mxu1 %vm1288_vm2, %v3239_v9 }
 0x60a   : >> { %v2158_v8 = vadd.f32 %v3245_v55, %v2156_v45  ;;  %2990 = vmatpush1.msk.msra.mxu0 %vm1288_vm2, %v3241_v10  ;;  %2985 = vmatmul.mubr.msk.f32.vlgmr.msra.gmra.mrb[60].mxu1 %vm1275_vm3, %v3594_v29 }
 0x60b   : >> { %2991 = vmatmul.mubr.msk.f32.vlgmr.msra.gmra.mrb[62].mxu0 %vm1275_vm3, %v3594_v29  ;;  %2235 = vmatprep.mubr.f32.mxu1 %v4480_v3 }
 0x60c   : >> { %3246 = vrcp.f32 %v2158_v8  ;;  %2338 = vmatprep.mubr.f32.mxu0 %v4480_v3 }
 0x60d   : >> { %3248 = vrcp.f32 %v2157_v56 }
 0x60e   : >> { %2986 = vmatmul.mubr.msk.f32.gmra.mrb[62].mxu1 %vm1275_vm3, %v3599_v30 }
 0x60f   : >> { %2992 = vmatmul.mubr.msk.f32.gmra.mrb[64].mxu0 %vm1275_vm3, %v3599_v30  ;;  %2241 = vmatprep.mubr.f32.mxu1 %v4480_v3 }
 0x610   : >> { %2344 = vmatprep.mubr.f32.mxu0 %v4480_v3 }
 0x612   : >> { %2987 = vmatmul.mubr.msk.f32.gmra.mrb[64].mxu1 %vm1275_vm3, %v3604_v31 }
 0x613   : >> { %2993 = vmatmul.mubr.msk.f32.gmra.mrb[66].mxu0 %vm1275_vm3, %v3604_v31  ;;  %2247 = vmatprep.mubr.f32.mxu1 %v4480_v3 }
 0x614   : >> { %2350 = vmatprep.mubr.f32.mxu0 %v4480_v3 }
 0x616   : >> { %v3247_v60 = vpop.eup %3246  ;;  %2988 = vmatmul.mubr.msk.f32.gmra.mrb[66].mxu1 %vm1275_vm3, %v3609_v32 }
 0x617   : >> { %v3249_v51 = vpop.eup %3248  ;;  %2994 = vmatmul.mubr.msk.f32.gmra.mrb[68].mxu0 %vm1275_vm3, %v3609_v32  ;;  %2995 = vmatprep.subr.msk.mxu1 %vm1288_vm2, %v3247_v60 }
 0x618   : >> { %2996 = vmatpush1.msk.msra.mxu1 %vm1288_vm2, %v3249_v51  ;;  %2447 = vmatprep.mubr.f32.mxu1 %v4480_v3 }
 0x619   : >> { %2576 = vmatprep.mubr.f32.mxu0 %v4480_v3 }
 0x61a   : >> { %2997 = vmatmul.mubr.msk.f32.vlgmr.msra.gmra.mrb[68].mxu1 %vm1275_vm3, %v3594_v29 }
 0x61b   : >> { %2453 = vmatprep.mubr.f32.mxu1 %v4480_v3 }
 0x61e   : >> { %2998 = vmatmul.mubr.msk.f32.gmra.mrb[70].mxu1 %vm1275_vm3, %v3599_v30 }
 0x61f   : >> { %2459 = vmatprep.mubr.f32.mxu1 %v4480_v3 }
 0x622   : >> { %2999 = vmatmul.mubr.msk.f32.gmra.mrb[72].mxu1 %vm1275_vm3, %v3604_v31 }
 0x623   : >> { %2465 = vmatprep.mubr.f32.mxu1 %v4480_v3 }
 0x626   : >> { %3000 = vmatmul.mubr.msk.f32.gmra.mrb[74].mxu1 %vm1275_vm3, %v3609_v32 }
 0x6dd   : >> { %v2231_v48 = vpop.f32.mrb[60].mxu1 }
 0x6de   : >> { %v2254_v0 = vmul.f32 %v2231_v48, %v4228_v13  ;;  %v2334_v33 = vpop.f32.mrb[62].mxu0  ;;  %v2233_v44 = vpop.f32.mrb[61].mxu1 }
 0x6df   : >> { %v2357_v52 = vmul.f32 %v2334_v33, %v4202_v46  ;;  %v2255_v53 = vmul.f32 %v2233_v44, %v4230_v36  ;;  %v2336_v27 = vpop.f32.mrb[63].mxu0  ;;  %v4491_v33 = vld [vmem:[#allocation30_spill] sm:$0xff]  ;;  %v4492_v44 = vld [vmem:[#allocation31_spill] sm:$0xff] }
 0x6e0   : >> { %v2358_v12 = vmul.f32 %v2336_v27, %v4204_v6  ;;  %v552_v27 = vpop.permute.xlu0 %551 }
 0x6e1   : >> { %v2237_v62 = vpop.f32.mrb[62].mxu1  ;;  %v2365_v7 = vadd.f32 %v2357_v52, %v2254_v0  ;;  %v4493_v52 = vld [vmem:[#allocation32_spill] sm:$0xff] }
 0x6e2   : >> { %v2256_v37 = vmul.f32 %v2237_v62, %v4234_v58  ;;  %v2340_v57 = vpop.f32.mrb[64].mxu0  ;;  %v2239_v25 = vpop.f32.mrb[63].mxu1  ;;  %v2366_v50 = vadd.f32 %v2358_v12, %v2255_v53  ;;  %v4494_v53 = vld [vmem:[#allocation33_spill] sm:$0xff] }
 0x6e3   : >> { %v2359_v38 = vmul.f32 %v2340_v57, %v4206_v61  ;;  %v2257_v13 = vmul.f32 %v2239_v25, %v4236_v54  ;;  %v2342_v63 = vpop.f32.mrb[65].mxu0  ;;  %v557_v12 = vpop.permute.xlu1 %556 }
 0x6e4   : >> { %v2360_v43 = vmul.f32 %v2342_v63, %v4208_v2  ;;  %v562_v62 = vpop.permute.xlu0 %561 }
 0x6e5   : >> { %v2243_v46 = vpop.f32.mrb[64].mxu1  ;;  %v2367_v20 = vadd.f32 %v2359_v38, %v2256_v37 }
 0x6e6   : >> { %v2258_v36 = vmul.f32 %v2243_v46, %v4240_v1  ;;  %v2346_v5 = vpop.f32.mrb[66].mxu0  ;;  %v2245_v6 = vpop.f32.mrb[65].mxu1  ;;  %v2368_v39 = vadd.f32 %v2360_v43, %v2257_v13 }
 0x6e7   : >> { %v2361_v28 = vmul.f32 %v2346_v5, %v4210_v41  ;;  %v2259_v58 = vmul.f32 %v2245_v6, %v4242_v35  ;;  %v2348_v26 = vpop.f32.mrb[67].mxu0 }
 0x6e8   : >> { %v2362_v49 = vmul.f32 %v2348_v26, %v4212_v4  ;;  %v2483_v37 = vpop.permute.xlu0 %2482 }
 0x6e9   : >> { %v2249_v61 = vpop.f32.mrb[66].mxu1  ;;  %v2369_v11 = vadd.f32 %v2361_v28, %v2258_v36  ;;  %v3098_v57 = vadd.f32 %v2483_v37, %v552_v27  ;;  %v4501_v37 = vld [vmem:[#allocation42_spill] sm:$0xff] }
 0x6ea   : >> { %v2260_v54 = vmul.f32 %v2249_v61, %v4246_v47  ;;  %v2352_v14 = vpop.f32.mrb[68].mxu0  ;;  %v2251_v2 = vpop.f32.mrb[67].mxu1  ;;  %v2370_v21 = vadd.f32 %v2362_v49, %v2259_v58 }
 0x6eb   : >> { %v2363_v59 = vmul.f32 %v2352_v14, %v4214_v34  ;;  %v2261_v1 = vmul.f32 %v2251_v2, %v4248_v23  ;;  %v2354_v15 = vpop.f32.mrb[69].mxu0 }
 0x6ec   : >> { %v2364_v22 = vmul.f32 %v2354_v15, %v4216_v40  ;;  %v2493_v46 = vpop.permute.xlu0 %2492 }
 0x6ed   : >> { %v2449_v41 = vpop.f32.mrb[68].mxu1  ;;  %v2371_v16 = vadd.f32 %v2363_v59, %v2260_v54  ;;  %v3106_v26 = vadd.f32 %v2493_v46, %v562_v62 }
 0x6ee   : >> { %v2472_v35 = vmul.f32 %v2449_v41, %v2365_v7  ;;  %v2451_v42 = vpop.f32.mrb[69].mxu1  ;;  %v2372_v17 = vadd.f32 %v2364_v22, %v2261_v1  ;;  %v567_v7 = vpop.permute.xlu1 %566 }
 0x6ef   : >> { %v2473_v4 = vmul.f32 %v2451_v42, %v2366_v50 }
 0x6f1   : >> { %v2455_v9 = vpop.f32.mrb[70].mxu1 }
 0x6f2   : >> { %v2474_v10 = vmul.f32 %v2455_v9, %v2367_v20  ;;  %v2457_v18 = vpop.f32.mrb[71].mxu1  ;;  %v2488_v13 = vpop.permute.xlu1 %2487 }
 0x6f3   : >> { %v2475_v47 = vmul.f32 %v2457_v18, %v2368_v39 }
 0x6f4   : >> { %v3090_v19 = vpack.c.bf16 %v2474_v10, %v2472_v35 }
 0x6f5   : >> { %v3088_v55 = vpack.c.bf16 %v2475_v47, %v2473_v4  ;;  %v2461_v56 = vpop.f32.mrb[72].mxu1 }
 0x6f6   : >> { %v2476_v45 = vmul.f32 %v2461_v56, %v2369_v11  ;;  %v2463_v34 = vpop.f32.mrb[73].mxu1  ;;  %v2498_v61 = vpop.permute.xlu1 %2497  ;;  %v4495_v56 = vld [vmem:[#allocation45_spill] sm:$0xff] }
 0x6f7   : >> { %v2477_v8 = vmul.f32 %v2463_v34, %v2370_v21  ;;  %3089 = vmatprep.subr.bf16.mxu0 %v3088_v55  ;;  %v3110_v15 = vadd.f32 %v2498_v61, %v567_v7 }
 0x6f8   : >> { %3091 = vmatpush1.bf16.msra.mxu0 %v3090_v19 }
 0x6f9   : >> { %v2467_v23 = vpop.f32.mrb[74].mxu1 }
 0x6fa   : >> { %v2478_v40 = vmul.f32 %v2467_v23, %v2371_v16  ;;  %v2469_v60 = vpop.f32.mrb[75].mxu1 }
 0x6fb   : >> { %v2479_v51 = vmul.f32 %v2469_v60, %v2372_v17 }
 0x6fc   : >> { %v3094_v48 = vpack.c.bf16 %v2478_v40, %v2476_v45 }
 0x6fd   : >> { %v3092_v0 = vpack.c.bf16 %v2479_v51, %v2477_v8  ;;  %v4496_v8 = vld [vmem:[#allocation41_spill] sm:$0xff]  ;;  %v4497_v51 = vld [vmem:[#allocation40_spill] sm:$0xff] }
 0x6ff   : >> { %3093 = vmatprep.subr.bf16.mxu0 %v3092_v0 }
 0x700   : >> { %3095 = vmatpush1.bf16.msra.mxu0 %v3094_v48  ;;  %v4498_v48 = vld [vmem:[#allocation44_spill] sm:$0xff] }
 0x703   : >> { %3001 = vmatmul.mubr.msk.f32.vlgmr.msra.gmra.mrb[0].mxu0 %vm755_vm1, %v4491_v33 }
 0x704   : >> { %2582 = vmatprep.mubr.f32.mxu0 %v4480_v3 }
 0x707   : >> { %3002 = vmatmul.mubr.msk.f32.gmra.mrb[2].mxu0 %vm755_vm1, %v4492_v44 }
 0x708   : >> { %2588 = vmatprep.mubr.f32.mxu0 %v4480_v3 }
 0x70b   : >> { %3003 = vmatmul.mubr.msk.f32.gmra.mrb[4].mxu0 %vm755_vm1, %v4493_v52 }
 0x70c   : >> { %2594 = vmatprep.mubr.f32.mxu0 %v4480_v3  ;;  %v3102_v3 = vadd.f32 %v2488_v13, %v557_v12  ;;  %v4500_v12 = vld [vmem:[#allocation43_spill] sm:$0xff] }
 0x70f   : >> { %3004 = vmatmul.mubr.msk.f32.gmra.mrb[6].mxu0 %vm755_vm1, %v4494_v53  ;;  %v4499_v53 = vld [vmem:[#allocation39_spill] sm:$0xff] }
 0x7d6   : >> { %v2578_v25 = vpop.f32.mrb[0].mxu0 }
 0x7d7   : >> { %v3099_v50 = vadd.f32 %v3098_v57, %v2578_v25  ;;  %v2580_v38 = vpop.f32.mrb[1].mxu0 }
 0x7d8   : >> { %v3101_v63 = vadd.f32 %v3098_v57, %v2580_v38 }
 0x7d9   : >> { %2611 = vst [vmem:[%s4328_s17] sm:$0xff] %v3099_v50  ;;  %v2631_v43 = vmul.f32 %v3099_v50, %v3099_v50 }
 0x7da   : >> { %2612 = vst [vmem:[%s4328_s17 + $0x8] sm:$0xff] %v3101_v63  ;;  %v2584_v20 = vpop.f32.mrb[2].mxu0  ;;  %v2619_v36 = vadd.f32 %v3101_v63, %v3099_v50  ;;  %v2632_v5 = vmul.f32 %v3101_v63, %v3101_v63  ;;  %v4502_v50 = vld [vmem:[#allocation38_spill] sm:$0xff] }
 0x7db   : >> { %v3103_v6 = vadd.f32 %v3102_v3, %v2584_v20  ;;  %v2586_v39 = vpop.f32.mrb[3].mxu0 }
 0x7dc   : >> { %v3105_v28 = vadd.f32 %v3102_v3, %v2586_v39  ;;  %2620 = vadd.xlane.f32.xlu0 %v2619_v36  ;;  %v2639_v58 = vadd.f32 %v2632_v5, %v2631_v43 }
 0x7dd   : >> { %2613 = vst [vmem:[%s4328_s17 + $0x40] sm:$0xff] %v3103_v6  ;;  %v2633_v49 = vmul.f32 %v3103_v6, %v3103_v6 }
 0x7de   : >> { %2614 = vst [vmem:[%s4328_s17 + $0x48] sm:$0xff] %v3105_v28  ;;  %2640 = vadd.xlane.f32.xlu1 %v2639_v58  ;;  %v2590_v11 = vpop.f32.mrb[4].mxu0  ;;  %v2634_v54 = vmul.f32 %v3105_v28, %v3105_v28  ;;  %v2622_v14 = vadd.f32 %v3105_v28, %v3103_v6 }
 0x7df   : >> { %v3107_v2 = vadd.f32 %v3106_v26, %v2590_v11  ;;  %v2592_v21 = vpop.f32.mrb[5].mxu0 }
 0x7e0   : >> { %v3109_v59 = vadd.f32 %v3106_v26, %v2592_v21  ;;  %v2642_v1 = vadd.f32 %v2634_v54, %v2633_v49 }
 0x7e1   : >> { %2615 = vst [vmem:[%s4328_s17 + $0x80] sm:$0xff] %v3107_v2  ;;  %v2635_v22 = vmul.f32 %v3107_v2, %v3107_v2 }
 0x7e2   : >> { %2616 = vst [vmem:[%s4328_s17 + $0x88] sm:$0xff] %v3109_v59  ;;  %2643 = vadd.xlane.f32.xlu0 %v2642_v1  ;;  %2623 = vadd.xlane.f32.xlu1 %v2622_v14  ;;  %v2596_v41 = vpop.f32.mrb[6].mxu0  ;;  %v2636_v16 = vmul.f32 %v3109_v59, %v3109_v59  ;;  %v2625_v35 = vadd.f32 %v3109_v59, %v3107_v2 }
 0x7e3   : >> { %v3111_v42 = vadd.f32 %v3110_v15, %v2596_v41  ;;  %v2598_v17 = vpop.f32.mrb[7].mxu0 }
 0x7e4   : >> { %v3113_v4 = vadd.f32 %v3110_v15, %v2598_v17  ;;  %v2645_v9 = vadd.f32 %v2636_v16, %v2635_v22 }
 0x7e5   : >> { %2617 = vst [vmem:[%s4328_s17 + $0xc0] sm:$0xff] %v3111_v42  ;;  %v2637_v10 = vmul.f32 %v3111_v42, %v3111_v42 }
 0x7e6   : >> { %2618 = vst [vmem:[%s4328_s17 + $0xc8] sm:$0xff] %v3113_v4  ;;  %2646 = vadd.xlane.f32.xlu1 %v2645_v9  ;;  %2626 = vadd.xlane.f32.xlu0 %v2625_v35  ;;  %v2628_v18 = vadd.f32 %v3113_v4, %v3111_v42  ;;  %v2638_v47 = vmul.f32 %v3113_v4, %v3113_v4 }
 0x7e8   : >> { %v2648_v19 = vadd.f32 %v2638_v47, %v2637_v10 }
 0x7ea   : >> { %2629 = vadd.xlane.f32.xlu0 %v2628_v18 }
 0x7ee   : >> { %2649 = vadd.xlane.f32.xlu0 %v2648_v19 }
 0x869   : >> { %v2621_v55 = vpop.xlane.xlu0 %2620 }
 0x86a   : >> { %v2651_v34 = vadd.f32 %v4495_v56, %v2621_v55  }
 0x86b   : >> { %v2641_v45 = vpop.xlane.xlu1 %2640 }
 0x86c   : >> { %v2655_v23 = vadd.f32 %v4496_v8, %v2641_v45   ;;  %2660 = vst.msk [vmem:[%s3549_s21] sm:$0xff] (%p528_p5), %vm2659_vm4, %v2651_v34 }
 0x86e   : > { %2665 = vst.msk [vmem:[%s3549_s21] sm:$0xff] (%p528_p5), %vm2664_vm5, %v2655_v23 }
 0x86f   : >> { %v2644_v40 = vpop.xlane.xlu0 %2643  ;;  %v2624_v60 = vpop.xlane.xlu1 %2623 }
 0x870   : >> { %v2656_v0 = vadd.f32 %v4497_v51, %v2644_v40   ;;  %v2652_v33 = vadd.f32 %v4498_v48, %v2624_v60   ;;  %v4510_v48 = vmov %v2651_v34 }
 0x872   : >> { %v4505_v43 = vmov %v2656_v0  ;;  %v4509_v47 = vmov %v2652_v33  ;;  %2661 = vst.msk [vmem:[%s3549_s21 + $0x8] sm:$0xff] (%p528_p5), %vm2659_vm4, %v2652_v33 }
 0x873   : >> { %v2647_v44 = vpop.xlane.xlu1 %2646  ;;  %v2627_v52 = vpop.xlane.xlu0 %2626  ;;  %2666 = vst.msk [vmem:[%s3549_s21 + $0x8] sm:$0xff] (%p528_p5), %vm2664_vm5, %v2656_v0 }
 0x874   : >> { %v2657_v27 = vadd.f32 %v4499_v53, %v2647_v44   ;;  %v2653_v62 = vadd.f32 %v4500_v12, %v2627_v52   ;;  %v4506_v44 = vmov %v2655_v23 }
 0x876   : >> { %v4504_v42 = vmov %v2657_v27  ;;  %v4508_v46 = vmov %v2653_v62  ;;  %2662 = vst.msk [vmem:[%s3549_s21 + $0x10] sm:$0xff] (%p528_p5), %vm2659_vm4, %v2653_v62 }
 0x877   : >> { %v2630_v7 = vpop.xlane.xlu0 %2629  ;;  %2667 = vst.msk [vmem:[%s3549_s21 + $0x10] sm:$0xff] (%p528_p5), %vm2664_vm5, %v2657_v27 }
 0x878   : >> { %v2654_v57 = vadd.f32 %v4501_v37, %v2630_v7   ;;  %530 = sbr.rel (!%p528_p5) target bundleno = 35 (0x23), region = 118 }
 0x87a   : >> { %v4507_v45 = vmov %v2654_v57  ;;  %2663 = vst.msk [vmem:[%s3549_s21 + $0x18] sm:$0xff] (%p528_p5), %vm2659_vm4, %v2654_v57 }
 0x87b   : >> { %v2650_v25 = vpop.xlane.xlu0 %2649 }
 0x87c   : >> { %v2658_v38 = vadd.f32 %v4502_v50, %v2650_v25  }
 0x87e   : >> { %v4503_v41 = vmov %v2658_v38  ;;  %2668 = vst.msk [vmem:[%s3549_s21 + $0x18] sm:$0xff] (%p528_p5), %vm2664_vm5, %v2658_v38 }
 0x87f PF: > { %s22_s19 = sadd.s32 1, %s3308_s19   ;;  %s4511_s17 = smov %s3304_s18 }
 0x880   : > { %p19_p6 = scmp.ge.s32.totalorder %s22_s19, 4   ;;  %s4512_s18 = smov %s4514_s20 }
 0x882   :  { %21 = sbr.rel (!%p19_p6) target bundleno = 2 (0x2), region = 129 }

</bundles_post_ra>
